<compile_context>
chip_gen: v6e
topology: v6e:2x2x1
jax: 0.10.0
libtpu: 0.0.40
codegen_flags: <defaults>
</compile_context>

<pallas_src>
import functools

import jax
import jax.numpy as jnp
from jax.experimental import pallas as pl
from jax.experimental.pallas import tpu as pltpu

VMEM = pltpu.MemorySpace.VMEM


# --------------------------- generation-aware tuning --------------------------

@functools.lru_cache(maxsize=None)
def _large_vmem_chip():
    """True on chips with 128 MiB VMEM per TensorCore (v4 / v5e / v6e)."""
    try:
        kind = jax.devices()[0].device_kind.lower()
    except Exception:
        return False
    return any(tag in kind for tag in ("v4", "v5", "v6"))


def _vmem_limit():
    # v7x has 64 MiB physical VMEM -> keep a conservative 48 MiB scoped budget.
    return (96 if _large_vmem_chip() else 48) * 1024 * 1024


def _row_tile_target():
    return 512 if _large_vmem_chip() else 256


def _compiler_params(grid_rank):
    return pltpu.CompilerParams(
        dimension_semantics=("parallel",) * grid_rank,
        vmem_limit_bytes=_vmem_limit())


def _pick_row_tile(M, target):
    """Return (tile, padded_M): tile is a multiple of 8; padding kept small."""
    Mp8 = -(-M // 8) * 8 if M >= 8 else 8
    t = min(target, Mp8)
    t -= t % 8
    d = t
    while d >= 128:                       # prefer an exact divisor (no extra pad)
        if Mp8 % d == 0:
            return d, Mp8
        d -= 8
    return t, -(-Mp8 // t) * t            # otherwise pad up to a multiple of t


# --------------------------- Pallas kernels -----------------------------------

def _attn_layer_kernel(x_ref, g1_ref, b1_ref, wqkv_ref, bqkv_ref, mask_ref,
                       wo_ref, bo_ref, o_ref, qkv_s, ctx_s, *,
                       num_heads, compute_dtype, approx_recip):
    """Fused LN1 + QKV proj + multi-head attention + out-proj + residual."""
    S, D = x_ref.shape[1], x_ref.shape[2]
    Dh = D // num_heads

    # LayerNorm in f32.
    x = x_ref[0].astype(jnp.float32)                          # (S, D)
    mean = jnp.mean(x, axis=-1, keepdims=True)
    var = jnp.mean(jnp.square(x - mean), axis=-1, keepdims=True)
    h = (x - mean) * jax.lax.rsqrt(var + 1e-5) * g1_ref[...] + b1_ref[...]

    # Single fused QKV matmul (K=D, N=3D).  The attention scale is already folded
    # into the Q columns of wqkv / bqkv at weight-prep time.
    qkv_s[...] = (jnp.dot(h.astype(compute_dtype), wqkv_ref[...],
                          preferred_element_type=jnp.float32)
                  + bqkv_ref[...]).astype(qkv_s.dtype)

    mask = mask_ref[...]                                       # (S, S), additive
    for hd in range(num_heads):
        # TODO(synk): odd-head 64-lane slices are not 128-lane aligned; a head grid
        # axis would make them free but would forfeit the single fused QKV matmul.
        q = qkv_s[:, hd * Dh:(hd + 1) * Dh]                    # (S, Dh)
        k = qkv_s[:, D + hd * Dh:D + (hd + 1) * Dh]
        v = qkv_s[:, 2 * D + hd * Dh:2 * D + (hd + 1) * Dh]
        # scores: q @ k^T (NT matmul on the MXU, no explicit transpose).
        s = jax.lax.dot_general(q, k, (((1,), (1,)), ((), ())),
                                preferred_element_type=jnp.float32)   # (S, S)
        s = s + mask
        s = s - jnp.max(s, axis=-1, keepdims=True)
        p = jnp.exp(s)                                         # EUP
        denom = jnp.sum(p, axis=-1, keepdims=True)
        if approx_recip:
            p = p * pl.reciprocal(denom, approx=True)          # EUP slot
        else:
            p = p / denom
        o_h = jnp.dot(p.astype(compute_dtype), v,
                      preferred_element_type=jnp.float32)      # (S, Dh)
        ctx_s[:, hd * Dh:(hd + 1) * Dh] = o_h.astype(ctx_s.dtype)

    # ONE out-projection over the full model dim (K = D), then residual add.
    y = jnp.dot(ctx_s[...], wo_ref[...], preferred_element_type=jnp.float32)
    o_ref[0] = (x + y + bo_ref[...]).astype(o_ref.dtype)


def _ln_mlp_residual_kernel(x_ref, g_ref, b_ref, wfc_ref, bfc_ref, wpr_ref,
                            bpr_ref, o_ref, *, compute_dtype):
    """Fused LN2 + FC + QuickGELU + proj + residual (row-tiled)."""
    x = x_ref[...].astype(jnp.float32)
    mean = jnp.mean(x, axis=-1, keepdims=True)
    var = jnp.mean(jnp.square(x - mean), axis=-1, keepdims=True)
    h = (x - mean) * jax.lax.rsqrt(var + 1e-5) * g_ref[...] + b_ref[...]
    a = jnp.dot(h.astype(compute_dtype), wfc_ref[...],
                preferred_element_type=jnp.float32) + bfc_ref[...]
    if compute_dtype == jnp.bfloat16:
        # bf16 sigmoid gate: faster EUP path on v6e/v7x; matmul accumulation stays f32.
        gate = jax.nn.sigmoid((1.702 * a).astype(jnp.bfloat16)).astype(jnp.float32)
    else:
        gate = jax.nn.sigmoid(1.702 * a)
    a = a * gate                                               # CLIP QuickGELU
    y = jnp.dot(a.astype(compute_dtype), wpr_ref[...],
                preferred_element_type=jnp.float32) + bpr_ref[...]
    o_ref[...] = (x + y).astype(o_ref.dtype)


def _ln_project_kernel(x_ref, g_ref, b_ref, w_ref, o_ref, *, compute_dtype):
    """Final LayerNorm + text projection on the gathered EOT rows only."""
    x = x_ref[...].astype(jnp.float32)
    mean = jnp.mean(x, axis=-1, keepdims=True)
    var = jnp.mean(jnp.square(x - mean), axis=-1, keepdims=True)
    h = (x - mean) * jax.lax.rsqrt(var + 1e-5) * g_ref[...] + b_ref[...]
    o_ref[...] = jnp.dot(h.astype(compute_dtype), w_ref[...],
                         preferred_element_type=jnp.float32).astype(o_ref.dtype)


# --------------------------- pallas_call wrappers ------------------------------

def attention_layer(x, g1, b1, wqkv, bqkv, mask, wo, bo, num_heads,
                    compute_dtype, approx_recip):
    B, S, D = x.shape
    kern = functools.partial(_attn_layer_kernel, num_heads=num_heads,
                             compute_dtype=compute_dtype, approx_recip=approx_recip)
    return pl.pallas_call(
        kern,
        grid=(B,),
        in_specs=[pl.BlockSpec((1, S, D), lambda i: (i, 0, 0)),
                  pl.BlockSpec((1, D), lambda i: (0, 0)),
                  pl.BlockSpec((1, D), lambda i: (0, 0)),
                  pl.BlockSpec((D, 3 * D), lambda i: (0, 0)),   # VMEM-resident
                  pl.BlockSpec((1, 3 * D), lambda i: (0, 0)),
                  pl.BlockSpec((S, S), lambda i: (0, 0)),
                  pl.BlockSpec((D, D), lambda i: (0, 0)),
                  pl.BlockSpec((1, D), lambda i: (0, 0))],
        out_specs=pl.BlockSpec((1, S, D), lambda i: (i, 0, 0)),
        out_shape=jax.ShapeDtypeStruct((B, S, D), x.dtype),
        scratch_shapes=[pltpu.VMEM((S, 3 * D), compute_dtype),   # fused qkv
                        pltpu.VMEM((S, D), compute_dtype)],      # attention context
        compiler_params=_compiler_params(1),
    )(x, g1.reshape(1, -1), b1.reshape(1, -1), wqkv, bqkv.reshape(1, -1),
      mask, wo, bo.reshape(1, -1))


def ln_mlp_residual(x2d, g, b, wfc, bfc, wpr, bpr, compute_dtype, tile_target):
    M, D = x2d.shape
    F = wfc.shape[1]
    tm, Mp = _pick_row_tile(M, tile_target)
    x_in = jnp.pad(x2d, ((0, Mp - M), (0, 0))) if Mp != M else x2d
    kern = functools.partial(_ln_mlp_residual_kernel, compute_dtype=compute_dtype)
    y = pl.pallas_call(
        kern,
        grid=(Mp // tm,),
        in_specs=[pl.BlockSpec((tm, D), lambda i: (i, 0)),
                  pl.BlockSpec((1, D), lambda i: (0, 0)),
                  pl.BlockSpec((1, D), lambda i: (0, 0)),
                  pl.BlockSpec((D, F), lambda i: (0, 0)),        # VMEM-resident
                  pl.BlockSpec((1, F), lambda i: (0, 0)),
                  pl.BlockSpec((F, D), lambda i: (0, 0)),        # VMEM-resident
                  pl.BlockSpec((1, D), lambda i: (0, 0))],
        out_specs=pl.BlockSpec((tm, D), lambda i: (i, 0)),
        out_shape=jax.ShapeDtypeStruct((Mp, D), x2d.dtype),
        compiler_params=_compiler_params(1),
    )(x_in, g.reshape(1, -1), b.reshape(1, -1), wfc, bfc.reshape(1, -1),
      wpr, bpr.reshape(1, -1))
    return y[:M] if Mp != M else y


def ln_project(x_eot, g, b, w, compute_dtype):
    B, _ = x_eot.shape
    E = w.shape[1]
    kern = functools.partial(_ln_project_kernel, compute_dtype=compute_dtype)
    return pl.pallas_call(
        kern,
        in_specs=[pl.BlockSpec(memory_space=VMEM)] * 4,
        out_specs=pl.BlockSpec(memory_space=VMEM),
        out_shape=jax.ShapeDtypeStruct((B, E), jnp.float32),
        compiler_params=pltpu.CompilerParams(vmem_limit_bytes=_vmem_limit()),
    )(x_eot, g.reshape(1, -1), b.reshape(1, -1), w)


# --------------------------- model (CLIP text tower) ---------------------------

def _prep_params(params, compute_dtype):
    """Fold attention scale into the Q projection; cast matmul weights to bf16."""
    D = params["positional_embedding"].shape[-1]
    H = params["num_heads"]
    scale = float(D // H) ** -0.5
    out = dict(params)
    if compute_dtype != jnp.float32:
        out["text_projection"] = params["text_projection"].astype(compute_dtype)
    blocks = []
    for b in params["blocks"]:
        nb = dict(b)
        wqkv, bqkv = b["in_proj_w"], b["in_proj_b"]
        nb["in_proj_w"] = jnp.concatenate([wqkv[:, :D] * scale, wqkv[:, D:]], axis=1)
        nb["in_proj_b"] = jnp.concatenate([bqkv[:D] * scale, bqkv[D:]])
        if compute_dtype != jnp.float32:
            for k in ("in_proj_w", "out_proj_w", "fc_w", "proj_w"):
                nb[k] = nb[k].astype(compute_dtype)
        blocks.append(nb)
    out["blocks"] = blocks
    return out


def text_clip_forward(params, text, compute_dtype=jnp.float32):
    """Pallas equivalent of TextCLIP.forward(text)."""
    params = _prep_params(params, compute_dtype)
    approx_recip = compute_dtype != jnp.float32

    # TODO(synk): token-embedding lookup is a data-dependent HBM gather; plain JAX.
    x = jnp.take(params["token_embedding"], text, axis=0).astype(jnp.float32)
    B, S, D = x.shape
    # Positional add left to XLA (cheaper than a dedicated (B,)-grid copy kernel).
    x = x + params["positional_embedding"][None, :S, :]

    mask = params["attn_mask"][:S, :S]
    tile_target = _row_tile_target()
    for p in params["blocks"]:
        x = attention_layer(x, p["ln1_g"], p["ln1_b"], p["in_proj_w"],
                            p["in_proj_b"], mask, p["out_proj_w"], p["out_proj_b"],
                            params["num_heads"], compute_dtype, approx_recip)
        y = ln_mlp_residual(x.reshape(B * S, D), p["ln2_g"], p["ln2_b"],
                            p["fc_w"], p["fc_b"], p["proj_w"], p["proj_b"],
                            compute_dtype, tile_target)
        x = y.reshape(B, S, D)

    # EOT gather, then fused LN_final + text projection on just those rows
    # (LayerNorm is row-wise, so LN-then-gather == gather-then-LN).
    eot = jnp.argmax(text, axis=-1)
    x_eot = x[jnp.arange(B), eot]      # TODO(synk): row-gather glue in plain JAX.
    return ln_project(x_eot, params["ln_final_g"], params["ln_final_b"],
                      params["text_projection"], compute_dtype)


# --------------------------- deterministic parameters --------------------------

def init_params(key, vocab, ctx, width, heads, layers, embed_dim):
    keys = jax.random.split(key, 3 + layers)

    def init(k, shape, std=0.02):
        return jax.random.normal(k, shape, jnp.float32) * std

    params = {
        "token_embedding": init(keys[0], (vocab, width)),
        "positional_embedding": init(keys[1], (ctx, width), 0.01),
        "text_projection": init(keys[2], (width, embed_dim), width ** -0.5),
        "ln_final_g": jnp.ones((width,), jnp.float32),
        "ln_final_b": jnp.zeros((width,), jnp.float32),
        "num_heads": heads,
    }
    blocks = []
    for layer in range(layers):
        bk = jax.random.split(keys[3 + layer], 4)
        blocks.append({
            "ln1_g": jnp.ones((width,), jnp.float32),
            "ln1_b": jnp.zeros((width,), jnp.float32),
            "ln2_g": jnp.ones((width,), jnp.float32),
            "ln2_b": jnp.zeros((width,), jnp.float32),
            "in_proj_w": init(bk[0], (width, 3 * width)),
            "in_proj_b": jnp.zeros((3 * width,), jnp.float32),
            "out_proj_w": init(bk[1], (width, width)),
            "out_proj_b": jnp.zeros((width,), jnp.float32),
            "fc_w": init(bk[2], (width, 4 * width)),
            "fc_b": jnp.zeros((4 * width,), jnp.float32),
            "proj_w": init(bk[3], (4 * width, width)),
            "proj_b": jnp.zeros((width,), jnp.float32),
        })
    params["blocks"] = blocks
    # CLIP causal attention mask (additive, upper triangle masked).
    params["attn_mask"] = jnp.triu(jnp.full((ctx, ctx), -1e9, jnp.float32), k=1)
    return params


# --------------------------- pure-JAX reference ---------------------------------

def _ref_forward(params, text):
    x = jnp.take(params["token_embedding"], text, 0)
    x = x + params["positional_embedding"][None]
    B, S, D = x.shape
    H = params["num_heads"]
    Dh = D // H

    def ln(v, g, b):
        m = v.mean(-1, keepdims=True)
        var = ((v - m) ** 2).mean(-1, keepdims=True)
        return (v - m) / jnp.sqrt(var + 1e-5) * g + b

    for p in params["blocks"]:
        h = ln(x, p["ln1_g"], p["ln1_b"])
        qkv = h @ p["in_proj_w"] + p["in_proj_b"]
        q, k, v = jnp.split(qkv, 3, axis=-1)
        q = q.reshape(B, S, H, Dh).transpose(0, 2, 1, 3)
        k = k.reshape(B, S, H, Dh).transpose(0, 2, 1, 3)
        v = v.reshape(B, S, H, Dh).transpose(0, 2, 1, 3)
        s = jnp.einsum("bhqd,bhkd->bhqk", q, k) / jnp.sqrt(Dh)
        s = s + params["attn_mask"][:S, :S]
        a = jax.nn.softmax(s, axis=-1)
        o = jnp.einsum("bhqk,bhkd->bhqd", a, v).transpose(0, 2, 1, 3).reshape(B, S, D)
        x = x + (o @ p["out_proj_w"] + p["out_proj_b"])
        h = ln(x, p["ln2_g"], p["ln2_b"])
        h = h @ p["fc_w"] + p["fc_b"]
        h = h * jax.nn.sigmoid(1.702 * h)
        x = x + (h @ p["proj_w"] + p["proj_b"])
    x = ln(x, params["ln_final_g"], params["ln_final_b"])
    eot = jnp.argmax(text, axis=-1)
    return x[jnp.arange(B), eot] @ params["text_projection"]


# --------------------------- main -----------------------------------------------

if __name__ == "__main__":
    # Full-f32 matmuls everywhere so the f32 kernel path matches the JAX reference
    # tightly (demo-only setting; not required for the kernels themselves).
    jax.config.update("jax_default_matmul_precision", "highest")

    B, S, D, H, L, E, V = 2, 8, 32, 4, 2, 16, 64  # batch, seq, width, heads, layers, embed, vocab
    key = jax.random.PRNGKey(0)
    kp, kt = jax.random.split(key, 2)

    params = init_params(kp, V, S, D, H, L, E)

    # Token path (matches PyTorch TextCLIP.forward(text)): tokens index the
    # embedding table and the max token marks the EOT position via argmax.
    text = jax.random.randint(kt, (B, S), 1, V - 1)
    eot_pos = jnp.array([S - 1, S // 2])
    text = text.at[jnp.arange(B), eot_pos].set(V - 1)

    ref = _ref_forward(params, text)

    # Strict check: f32 compute path (exact softmax reciprocal).
    out = text_clip_forward(params, text, compute_dtype=jnp.float32)
    out = jax.block_until_ready(out)
    assert out.shape == (B, E)
    assert jnp.allclose(out, ref, atol=1e-3, rtol=1e-3), (
        f"f32 path: max abs err {jnp.max(jnp.abs(out - ref))}"
    )

    # Fast path: bf16 MXU operands + approx EUP reciprocal + bf16 QuickGELU gate.
    out_bf16 = text_clip_forward(params, text, compute_dtype=jnp.bfloat16)
    out_bf16 = jax.block_until_ready(out_bf16)
    assert jnp.allclose(out_bf16, ref, atol=5e-2, rtol=5e-2), (
        f"bf16 path: max abs err {jnp.max(jnp.abs(out_bf16 - ref))}"
    )

    print("KERNEL_OK")
</pallas_src>

<mosaic_0001>
module attributes {stable_mosaic.version = 11 : i64} {
  func.func @_attn_layer_kernel(%arg0: i32, %arg1: memref<1x8x32xf32, #tpu.memory_space<vmem>>, %arg2: memref<1x32xf32, #tpu.memory_space<vmem>>, %arg3: memref<1x32xf32, #tpu.memory_space<vmem>>, %arg4: memref<32x96xf32, #tpu.memory_space<vmem>>, %arg5: memref<1x96xf32, #tpu.memory_space<vmem>>, %arg6: memref<8x8xf32, #tpu.memory_space<vmem>>, %arg7: memref<32x32xf32, #tpu.memory_space<vmem>>, %arg8: memref<1x32xf32, #tpu.memory_space<vmem>>, %arg9: memref<1x8x32xf32, #tpu.memory_space<vmem>>, %arg10: memref<8x96xf32, #tpu.memory_space<vmem>>, %arg11: memref<8x32xf32, #tpu.memory_space<vmem>>) attributes {dimension_semantics = [#tpu.dimension_semantics<parallel>], iteration_bounds = array<i64: 2>, scalar_prefetch = 0 : i64, scratch_operands = 2 : i64, tpu.core_type = #tpu.core_type<tc>, window_params = [{transform_indices = @transform_0, window_bounds = array<i64: 1, 8, 32>}, {pipeline_mode = #tpu.pipeline_mode<synchronous>, transform_indices = @transform_1, window_bounds = array<i64: 1, 32>}, {pipeline_mode = #tpu.pipeline_mode<synchronous>, transform_indices = @transform_2, window_bounds = array<i64: 1, 32>}, {pipeline_mode = #tpu.pipeline_mode<synchronous>, transform_indices = @transform_3, window_bounds = array<i64: 32, 96>}, {pipeline_mode = #tpu.pipeline_mode<synchronous>, transform_indices = @transform_4, window_bounds = array<i64: 1, 96>}, {pipeline_mode = #tpu.pipeline_mode<synchronous>, transform_indices = @transform_5, window_bounds = array<i64: 8, 8>}, {pipeline_mode = #tpu.pipeline_mode<synchronous>, transform_indices = @transform_6, window_bounds = array<i64: 32, 32>}, {pipeline_mode = #tpu.pipeline_mode<synchronous>, transform_indices = @transform_7, window_bounds = array<i64: 1, 32>}, {transform_indices = @transform_8, window_bounds = array<i64: 1, 8, 32>}]} {
    %c0 = arith.constant 0 : index
    %c0_0 = arith.constant 0 : index
    %c0_1 = arith.constant 0 : index
    %0 = vector.load %arg1[%c0, %c0_0, %c0_1] : memref<1x8x32xf32, #tpu.memory_space<vmem>>, vector<1x8x32xf32>
    %1 = vector.shape_cast %0 : vector<1x8x32xf32> to vector<8x32xf32>
    %cst = arith.constant dense<0.000000e+00> : vector<8xf32>
    %2 = vector.multi_reduction <add>, %1, %cst [1] : vector<8x32xf32> to vector<8xf32>
    %3 = vector.shape_cast %2 : vector<8xf32> to vector<8x1xf32>
    %cst_2 = arith.constant 3.200000e+01 : f32
    %4 = vector.broadcast %cst_2 : f32 to vector<8x1xf32>
    %5 = arith.divf %3, %4 : vector<8x1xf32>
    %6 = vector.broadcast %5 : vector<8x1xf32> to vector<8x32xf32>
    %7 = arith.subf %1, %6 : vector<8x32xf32>
    %8 = arith.mulf %7, %7 : vector<8x32xf32>
    %cst_3 = arith.constant dense<0.000000e+00> : vector<8xf32>
    %9 = vector.multi_reduction <add>, %8, %cst_3 [1] : vector<8x32xf32> to vector<8xf32>
    %10 = vector.shape_cast %9 : vector<8xf32> to vector<8x1xf32>
    %cst_4 = arith.constant 3.200000e+01 : f32
    %11 = vector.broadcast %cst_4 : f32 to vector<8x1xf32>
    %12 = arith.divf %10, %11 : vector<8x1xf32>
    %13 = vector.broadcast %5 : vector<8x1xf32> to vector<8x32xf32>
    %14 = arith.subf %1, %13 : vector<8x32xf32>
    %cst_5 = arith.constant 9.99999974E-6 : f32
    %15 = vector.broadcast %cst_5 : f32 to vector<8x1xf32>
    %16 = arith.addf %12, %15 : vector<8x1xf32>
    %17 = math.rsqrt %16 : vector<8x1xf32>
    %18 = vector.broadcast %17 : vector<8x1xf32> to vector<8x32xf32>
    %19 = arith.mulf %14, %18 : vector<8x32xf32>
    %c0_6 = arith.constant 0 : index
    %c0_7 = arith.constant 0 : index
    %20 = vector.load %arg2[%c0_6, %c0_7] : memref<1x32xf32, #tpu.memory_space<vmem>>, vector<1x32xf32>
    %21 = vector.broadcast %20 : vector<1x32xf32> to vector<8x32xf32>
    %22 = arith.mulf %19, %21 : vector<8x32xf32>
    %c0_8 = arith.constant 0 : index
    %c0_9 = arith.constant 0 : index
    %23 = vector.load %arg3[%c0_8, %c0_9] : memref<1x32xf32, #tpu.memory_space<vmem>>, vector<1x32xf32>
    %24 = vector.broadcast %23 : vector<1x32xf32> to vector<8x32xf32>
    %25 = arith.addf %22, %24 : vector<8x32xf32>
    %c0_10 = arith.constant 0 : index
    %c0_11 = arith.constant 0 : index
    %26 = vector.load %arg4[%c0_10, %c0_11] : memref<32x96xf32, #tpu.memory_space<vmem>>, vector<32x96xf32>
    %cst_12 = arith.constant dense<0.000000e+00> : vector<8x96xf32>
    %27 = tpu.matmul %25, %26, %cst_12 {dimension_numbers = #tpu.dot_dimension_numbers<[1], [0], [0], [1], [0, 0, 1, 1], [], []>, precision = #tpu.contract_precision<fp32>} : vector<8x32xf32>, vector<32x96xf32>, vector<8x96xf32> -> vector<8x96xf32>
    %c0_13 = arith.constant 0 : index
    %c0_14 = arith.constant 0 : index
    %28 = vector.load %arg5[%c0_13, %c0_14] : memref<1x96xf32, #tpu.memory_space<vmem>>, vector<1x96xf32>
    %29 = vector.broadcast %28 : vector<1x96xf32> to vector<8x96xf32>
    %30 = arith.addf %27, %29 : vector<8x96xf32>
    %c0_15 = arith.constant 0 : index
    %c0_16 = arith.constant 0 : index
    %31 = vector.load %arg10[%c0_15, %c0_16] : memref<8x96xf32, #tpu.memory_space<vmem>>, vector<8x96xf32>
    tpu.vector_store %arg10[%c0_15, %c0_16], %30 {strides = array<i32>} : memref<8x96xf32, #tpu.memory_space<vmem>>, vector<8x96xf32>,
    %c0_17 = arith.constant 0 : index
    %c0_18 = arith.constant 0 : index
    %32 = vector.load %arg6[%c0_17, %c0_18] : memref<8x8xf32, #tpu.memory_space<vmem>>, vector<8x8xf32>
    %c0_19 = arith.constant 0 : index
    %c0_20 = arith.constant 0 : index
    %33 = vector.load %arg10[%c0_19, %c0_20] : memref<8x96xf32, #tpu.memory_space<vmem>>, vector<8x8xf32>
    %c0_21 = arith.constant 0 : index
    %c32 = arith.constant 32 : index
    %34 = vector.load %arg10[%c0_21, %c32] : memref<8x96xf32, #tpu.memory_space<vmem>>, vector<8x8xf32>
    %c0_22 = arith.constant 0 : index
    %c64 = arith.constant 64 : index
    %35 = vector.load %arg10[%c0_22, %c64] : memref<8x96xf32, #tpu.memory_space<vmem>>, vector<8x8xf32>
    %cst_23 = arith.constant dense<0.000000e+00> : vector<8x8xf32>
    %36 = tpu.matmul %33, %34, %cst_23 {dimension_numbers = #tpu.dot_dimension_numbers<[1], [1], [0], [0], [0, 0, 1, 0], [], []>, precision = #tpu.contract_precision<fp32>} : vector<8x8xf32>, vector<8x8xf32>, vector<8x8xf32> -> vector<8x8xf32>
    %37 = arith.addf %36, %32 : vector<8x8xf32>
    %cst_24 = arith.constant dense<0xFF800000> : vector<8xf32>
    %38 = vector.multi_reduction <maximumf>, %37, %cst_24 [1] : vector<8x8xf32> to vector<8xf32>
    %39 = vector.shape_cast %38 : vector<8xf32> to vector<8x1xf32>
    %40 = vector.broadcast %39 : vector<8x1xf32> to vector<8x8xf32>
    %41 = arith.subf %37, %40 : vector<8x8xf32>
    %42 = math.exp %41 : vector<8x8xf32>
    %cst_25 = arith.constant dense<0.000000e+00> : vector<8xf32>
    %43 = vector.multi_reduction <add>, %42, %cst_25 [1] : vector<8x8xf32> to vector<8xf32>
    %44 = vector.shape_cast %43 : vector<8xf32> to vector<8x1xf32>
    %45 = vector.broadcast %44 : vector<8x1xf32> to vector<8x8xf32>
    %46 = arith.divf %42, %45 : vector<8x8xf32>
    %cst_26 = arith.constant dense<0.000000e+00> : vector<8x8xf32>
    %47 = tpu.matmul %46, %35, %cst_26 {dimension_numbers = #tpu.dot_dimension_numbers<[1], [0], [0], [1], [0, 0, 1, 1], [], []>, precision = #tpu.contract_precision<fp32>} : vector<8x8xf32>, vector<8x8xf32>, vector<8x8xf32> -> vector<8x8xf32>
    %c0_27 = arith.constant 0 : index
    %c0_28 = arith.constant 0 : index
    %48 = vector.load %arg11[%c0_27, %c0_28] : memref<8x32xf32, #tpu.memory_space<vmem>>, vector<8x8xf32>
    tpu.vector_store %arg11[%c0_27, %c0_28], %47 {strides = array<i32>} : memref<8x32xf32, #tpu.memory_space<vmem>>, vector<8x8xf32>,
    %c0_29 = arith.constant 0 : index
    %c8 = arith.constant 8 : index
    %49 = vector.load %arg10[%c0_29, %c8] : memref<8x96xf32, #tpu.memory_space<vmem>>, vector<8x8xf32>
    %c0_30 = arith.constant 0 : index
    %c40 = arith.constant 40 : index
    %50 = vector.load %arg10[%c0_30, %c40] : memref<8x96xf32, #tpu.memory_space<vmem>>, vector<8x8xf32>
    %c0_31 = arith.constant 0 : index
    %c72 = arith.constant 72 : index
    %51 = vector.load %arg10[%c0_31, %c72] : memref<8x96xf32, #tpu.memory_space<vmem>>, vector<8x8xf32>
    %cst_32 = arith.constant dense<0.000000e+00> : vector<8x8xf32>
    %52 = tpu.matmul %49, %50, %cst_32 {dimension_numbers = #tpu.dot_dimension_numbers<[1], [1], [0], [0], [0, 0, 1, 0], [], []>, precision = #tpu.contract_precision<fp32>} : vector<8x8xf32>, vector<8x8xf32>, vector<8x8xf32> -> vector<8x8xf32>
    %53 = arith.addf %52, %32 : vector<8x8xf32>
    %cst_33 = arith.constant dense<0xFF800000> : vector<8xf32>
    %54 = vector.multi_reduction <maximumf>, %53, %cst_33 [1] : vector<8x8xf32> to vector<8xf32>
    %55 = vector.shape_cast %54 : vector<8xf32> to vector<8x1xf32>
    %56 = vector.broadcast %55 : vector<8x1xf32> to vector<8x8xf32>
    %57 = arith.subf %53, %56 : vector<8x8xf32>
    %58 = math.exp %57 : vector<8x8xf32>
    %cst_34 = arith.constant dense<0.000000e+00> : vector<8xf32>
    %59 = vector.multi_reduction <add>, %58, %cst_34 [1] : vector<8x8xf32> to vector<8xf32>
    %60 = vector.shape_cast %59 : vector<8xf32> to vector<8x1xf32>
    %61 = vector.broadcast %60 : vector<8x1xf32> to vector<8x8xf32>
    %62 = arith.divf %58, %61 : vector<8x8xf32>
    %cst_35 = arith.constant dense<0.000000e+00> : vector<8x8xf32>
    %63 = tpu.matmul %62, %51, %cst_35 {dimension_numbers = #tpu.dot_dimension_numbers<[1], [0], [0], [1], [0, 0, 1, 1], [], []>, precision = #tpu.contract_precision<fp32>} : vector<8x8xf32>, vector<8x8xf32>, vector<8x8xf32> -> vector<8x8xf32>
    %c0_36 = arith.constant 0 : index
    %c8_37 = arith.constant 8 : index
    %64 = vector.load %arg11[%c0_36, %c8_37] : memref<8x32xf32, #tpu.memory_space<vmem>>, vector<8x8xf32>
    tpu.vector_store %arg11[%c0_36, %c8_37], %63 {strides = array<i32>} : memref<8x32xf32, #tpu.memory_space<vmem>>, vector<8x8xf32>,
    %c0_38 = arith.constant 0 : index
    %c16 = arith.constant 16 : index
    %65 = vector.load %arg10[%c0_38, %c16] : memref<8x96xf32, #tpu.memory_space<vmem>>, vector<8x8xf32>
    %c0_39 = arith.constant 0 : index
    %c48 = arith.constant 48 : index
    %66 = vector.load %arg10[%c0_39, %c48] : memref<8x96xf32, #tpu.memory_space<vmem>>, vector<8x8xf32>
    %c0_40 = arith.constant 0 : index
    %c80 = arith.constant 80 : index
    %67 = vector.load %arg10[%c0_40, %c80] : memref<8x96xf32, #tpu.memory_space<vmem>>, vector<8x8xf32>
    %cst_41 = arith.constant dense<0.000000e+00> : vector<8x8xf32>
    %68 = tpu.matmul %65, %66, %cst_41 {dimension_numbers = #tpu.dot_dimension_numbers<[1], [1], [0], [0], [0, 0, 1, 0], [], []>, precision = #tpu.contract_precision<fp32>} : vector<8x8xf32>, vector<8x8xf32>, vector<8x8xf32> -> vector<8x8xf32>
    %69 = arith.addf %68, %32 : vector<8x8xf32>
    %cst_42 = arith.constant dense<0xFF800000> : vector<8xf32>
    %70 = vector.multi_reduction <maximumf>, %69, %cst_42 [1] : vector<8x8xf32> to vector<8xf32>
    %71 = vector.shape_cast %70 : vector<8xf32> to vector<8x1xf32>
    %72 = vector.broadcast %71 : vector<8x1xf32> to vector<8x8xf32>
    %73 = arith.subf %69, %72 : vector<8x8xf32>
    %74 = math.exp %73 : vector<8x8xf32>
    %cst_43 = arith.constant dense<0.000000e+00> : vector<8xf32>
    %75 = vector.multi_reduction <add>, %74, %cst_43 [1] : vector<8x8xf32> to vector<8xf32>
    %76 = vector.shape_cast %75 : vector<8xf32> to vector<8x1xf32>
    %77 = vector.broadcast %76 : vector<8x1xf32> to vector<8x8xf32>
    %78 = arith.divf %74, %77 : vector<8x8xf32>
    %cst_44 = arith.constant dense<0.000000e+00> : vector<8x8xf32>
    %79 = tpu.matmul %78, %67, %cst_44 {dimension_numbers = #tpu.dot_dimension_numbers<[1], [0], [0], [1], [0, 0, 1, 1], [], []>, precision = #tpu.contract_precision<fp32>} : vector<8x8xf32>, vector<8x8xf32>, vector<8x8xf32> -> vector<8x8xf32>
    %c0_45 = arith.constant 0 : index
    %c16_46 = arith.constant 16 : index
    %80 = vector.load %arg11[%c0_45, %c16_46] : memref<8x32xf32, #tpu.memory_space<vmem>>, vector<8x8xf32>
    tpu.vector_store %arg11[%c0_45, %c16_46], %79 {strides = array<i32>} : memref<8x32xf32, #tpu.memory_space<vmem>>, vector<8x8xf32>,
    %c0_47 = arith.constant 0 : index
    %c24 = arith.constant 24 : index
    %81 = vector.load %arg10[%c0_47, %c24] : memref<8x96xf32, #tpu.memory_space<vmem>>, vector<8x8xf32>
    %c0_48 = arith.constant 0 : index
    %c56 = arith.constant 56 : index
    %82 = vector.load %arg10[%c0_48, %c56] : memref<8x96xf32, #tpu.memory_space<vmem>>, vector<8x8xf32>
    %c0_49 = arith.constant 0 : index
    %c88 = arith.constant 88 : index
    %83 = vector.load %arg10[%c0_49, %c88] : memref<8x96xf32, #tpu.memory_space<vmem>>, vector<8x8xf32>
    %cst_50 = arith.constant dense<0.000000e+00> : vector<8x8xf32>
    %84 = tpu.matmul %81, %82, %cst_50 {dimension_numbers = #tpu.dot_dimension_numbers<[1], [1], [0], [0], [0, 0, 1, 0], [], []>, precision = #tpu.contract_precision<fp32>} : vector<8x8xf32>, vector<8x8xf32>, vector<8x8xf32> -> vector<8x8xf32>
    %85 = arith.addf %84, %32 : vector<8x8xf32>
    %cst_51 = arith.constant dense<0xFF800000> : vector<8xf32>
    %86 = vector.multi_reduction <maximumf>, %85, %cst_51 [1] : vector<8x8xf32> to vector<8xf32>
    %87 = vector.shape_cast %86 : vector<8xf32> to vector<8x1xf32>
    %88 = vector.broadcast %87 : vector<8x1xf32> to vector<8x8xf32>
    %89 = arith.subf %85, %88 : vector<8x8xf32>
    %90 = math.exp %89 : vector<8x8xf32>
    %cst_52 = arith.constant dense<0.000000e+00> : vector<8xf32>
    %91 = vector.multi_reduction <add>, %90, %cst_52 [1] : vector<8x8xf32> to vector<8xf32>
    %92 = vector.shape_cast %91 : vector<8xf32> to vector<8x1xf32>
    %93 = vector.broadcast %92 : vector<8x1xf32> to vector<8x8xf32>
    %94 = arith.divf %90, %93 : vector<8x8xf32>
    %cst_53 = arith.constant dense<0.000000e+00> : vector<8x8xf32>
    %95 = tpu.matmul %94, %83, %cst_53 {dimension_numbers = #tpu.dot_dimension_numbers<[1], [0], [0], [1], [0, 0, 1, 1], [], []>, precision = #tpu.contract_precision<fp32>} : vector<8x8xf32>, vector<8x8xf32>, vector<8x8xf32> -> vector<8x8xf32>
    %c0_54 = arith.constant 0 : index
    %c24_55 = arith.constant 24 : index
    %96 = vector.load %arg11[%c0_54, %c24_55] : memref<8x32xf32, #tpu.memory_space<vmem>>, vector<8x8xf32>
    tpu.vector_store %arg11[%c0_54, %c24_55], %95 {strides = array<i32>} : memref<8x32xf32, #tpu.memory_space<vmem>>, vector<8x8xf32>,
    %c0_56 = arith.constant 0 : index
    %c0_57 = arith.constant 0 : index
    %97 = vector.load %arg11[%c0_56, %c0_57] : memref<8x32xf32, #tpu.memory_space<vmem>>, vector<8x32xf32>
    %c0_58 = arith.constant 0 : index
    %c0_59 = arith.constant 0 : index
    %98 = vector.load %arg7[%c0_58, %c0_59] : memref<32x32xf32, #tpu.memory_space<vmem>>, vector<32x32xf32>
    %cst_60 = arith.constant dense<0.000000e+00> : vector<8x32xf32>
    %99 = tpu.matmul %97, %98, %cst_60 {dimension_numbers = #tpu.dot_dimension_numbers<[1], [0], [0], [1], [0, 0, 1, 1], [], []>, precision = #tpu.contract_precision<fp32>} : vector<8x32xf32>, vector<32x32xf32>, vector<8x32xf32> -> vector<8x32xf32>
    %100 = arith.addf %1, %99 : vector<8x32xf32>
    %c0_61 = arith.constant 0 : index
    %c0_62 = arith.constant 0 : index
    %101 = vector.load %arg8[%c0_61, %c0_62] : memref<1x32xf32, #tpu.memory_space<vmem>>, vector<1x32xf32>
    %102 = vector.broadcast %101 : vector<1x32xf32> to vector<8x32xf32>
    %103 = arith.addf %100, %102 : vector<8x32xf32>
    %c0_63 = arith.constant 0 : index
    %c0_64 = arith.constant 0 : index
    %c0_65 = arith.constant 0 : index
    %104 = vector.load %arg9[%c0_63, %c0_64, %c0_65] : memref<1x8x32xf32, #tpu.memory_space<vmem>>, vector<1x8x32xf32>
    %105 = vector.shape_cast %104 : vector<1x8x32xf32> to vector<8x32xf32>
    %106 = vector.shape_cast %103 : vector<8x32xf32> to vector<1x8x32xf32>
    tpu.vector_store %arg9[%c0_63, %c0_64, %c0_65], %106 {strides = array<i32>} : memref<1x8x32xf32, #tpu.memory_space<vmem>>, vector<1x8x32xf32>,
    return
  }
  func.func @transform_0(%arg0: i32) -> (i32, i32, i32) {
    %c0_i32 = arith.constant 0 : i32
    %c0_i32_0 = arith.constant 0 : i32
    %c0_i32_1 = arith.constant 0 : i32
    return %arg0, %c0_i32, %c0_i32_0 : i32, i32, i32
  }
  func.func @transform_1(%arg0: i32) -> (i32, i32) {
    %c0_i32 = arith.constant 0 : i32
    %c0_i32_0 = arith.constant 0 : i32
    %c0_i32_1 = arith.constant 0 : i32
    return %c0_i32, %c0_i32_0 : i32, i32
  }
  func.func @transform_2(%arg0: i32) -> (i32, i32) {
    %c0_i32 = arith.constant 0 : i32
    %c0_i32_0 = arith.constant 0 : i32
    %c0_i32_1 = arith.constant 0 : i32
    return %c0_i32, %c0_i32_0 : i32, i32
  }
  func.func @transform_3(%arg0: i32) -> (i32, i32) {
    %c0_i32 = arith.constant 0 : i32
    %c0_i32_0 = arith.constant 0 : i32
    %c0_i32_1 = arith.constant 0 : i32
    return %c0_i32, %c0_i32_0 : i32, i32
  }
  func.func @transform_4(%arg0: i32) -> (i32, i32) {
    %c0_i32 = arith.constant 0 : i32
    %c0_i32_0 = arith.constant 0 : i32
    %c0_i32_1 = arith.constant 0 : i32
    return %c0_i32, %c0_i32_0 : i32, i32
  }
  func.func @transform_5(%arg0: i32) -> (i32, i32) {
    %c0_i32 = arith.constant 0 : i32
    %c0_i32_0 = arith.constant 0 : i32
    %c0_i32_1 = arith.constant 0 : i32
    return %c0_i32, %c0_i32_0 : i32, i32
  }
  func.func @transform_6(%arg0: i32) -> (i32, i32) {
    %c0_i32 = arith.constant 0 : i32
    %c0_i32_0 = arith.constant 0 : i32
    %c0_i32_1 = arith.constant 0 : i32
    return %c0_i32, %c0_i32_0 : i32, i32
  }
  func.func @transform_7(%arg0: i32) -> (i32, i32) {
    %c0_i32 = arith.constant 0 : i32
    %c0_i32_0 = arith.constant 0 : i32
    %c0_i32_1 = arith.constant 0 : i32
    return %c0_i32, %c0_i32_0 : i32, i32
  }
  func.func @transform_8(%arg0: i32) -> (i32, i32, i32) {
    %c0_i32 = arith.constant 0 : i32
    %c0_i32_0 = arith.constant 0 : i32
    %c0_i32_1 = arith.constant 0 : i32
    return %arg0, %c0_i32, %c0_i32_0 : i32, i32, i32
  }
}

</mosaic_0001>

<bundles_post_ra>
// kernel: tpu_custom_call.1
= control target key start
LH: loop header
LB: loop body
LE: loop exit
PB: predicated region body
PF: predicated region fallthrough
CT: control target
= control target key end

     0   :  { %s6777_s0 = inlined_call_operand.hbm [shape: f32[2,8,32], index: 0, kind: input, shape index: {}]   ;;  %s6778_s1 = inlined_call_operand.vmem [shape: f32[1,32], index: 1, kind: input, shape index: {}]   ;;  %s6779_s2 = inlined_call_operand.hbm [shape: f32[1,32], index: 2, kind: input, shape index: {}]   ;;  %s6780_s3 = inlined_call_operand.hbm [shape: f32[32,96], index: 3, kind: input, shape index: {}]   ;;  %s6781_s4 = inlined_call_operand.hbm [shape: f32[1,96], index: 4, kind: input, shape index: {}]   ;;  %s6782_s5 = inlined_call_operand.vmem [shape: f32[8,8], index: 5, kind: input, shape index: {}]   ;;  %s6783_s6 = inlined_call_operand.hbm [shape: f32[32,32], index: 6, kind: input, shape index: {}]   ;;  %s6784_s7 = inlined_call_operand.vmem [shape: f32[1,32], index: 7, kind: input, shape index: {}]   ;;  %s6785_s8 = inlined_call_operand.hbm [shape: f32[2,8,32], index: 8, kind: output, shape index: {}]  }
   0x1   :  { %6790 = sst [smem:[#allocation18_spill]] %s6779_s2 }
   0x2   :  { %6791 = sst [smem:[#allocation19_spill]] %s6780_s3 }
   0x3   :  { %6792 = sst [smem:[#allocation20_spill]] %s6781_s4 }
   0x4   :  { %13 = vsyncpa [#allocation5], 0 }
   0x5   :  { %15 = vsyncpa [#allocation5 + $0x1], 0 }
   0x6   :  { %16 = vsyncpa [#allocation8], 0 }
   0x7   :  { %17 = vsyncpa [#allocation11], 0 }
   0x8   :  { %18 = vsyncpa [#allocation6], 0 }
   0x9   :  { %20 = vsyncpa [#allocation6 + $0x1], 0  ;;  %s6179_s27 = smov 0   ;;  %s6181_s28 = smov 0  }
   0xa   :  { %s6183_s29 = smov 0   ;;  %s6185_s30 = smov 0  }
   0xb LB: > { %s6110_s9 = smov [#allocation7]   ;;  %s6200_s11 = sadd.s32 4294967295, %s6108_s30   ;;  %s6108_s30 = sphi %s6185_s30, %s6816_s30   ;;  %s6104_s29 = sphi %s6183_s29, %s6815_s29   ;;  %s6100_s28 = sphi %s6181_s28, %s6814_s28   ;;  %s6096_s27 = sphi %s6179_s27, %s6813_s27  }
   0xc   : > { %s246_s10 = sshll.u32 %s6110_s9, 4  ;;  %p5229_p0 = scmp.ge.s32.totalorder %s6108_s30, 1  ;;  %s247_s10 = int_to_ptr.vmem [resolvable:$true] %s246_s10 }
   0xd   : > { %p6786_p1 = scmp.eq.s32.totalorder %s6200_s11, 0  ;;  %p230_p2 = scmp.lt.s32.totalorder %s6108_s30, 3 }
   0xe   : > { %s6111_s13 = smov [#allocation10]   ;;  %s6112_s15 = smov [#allocation9]  }
   0xf   : > { %p6205_p3 = pnand %p5229_p0, %p230_p2  ;;  %s270_s14 = sshll.u32 %s6111_s13, 4  ;;  %s271_s14 = int_to_ptr.vmem [resolvable:$true] %s270_s14 }
  0x10   : > { %s256_s16 = sshll.u32 %s6112_s15, 4  ;;  %s5915_s18 = scalar_lea.vmem %s247_s10, 16  ;;  %s6218_s16 = int_to_ptr.vmem [resolvable:$true] %s256_s16 }
  0x11   : > { %s6793_s12 = scalar_select %p6205_p3, 1, 0 }
  0x12   : > { %p5800_p5 = pneg %p6205_p3  ;;  %p5916_p8 = scmp.ne.s32.totalorder %s247_s10, %s5915_s18 }
  0x13   : > { %s5922_s19 = scalar_lea.vmem %s247_s10, 32  ;;  %p5923_p11 = scmp.lt.s32.totalorder %s247_s10, %s247_s10 }
  0x14   : > { %p6214_p6 = pnand %p5800_p5, %p6786_p1  ;;  %p5924_p12 = scmp.lt.s32.totalorder %s5922_s19, %s5915_s18 }
  0x16   : > { %p5906_p7 = pneg %p6214_p6  ;;  %p5925_p13 = por %p5924_p12, %p5923_p11 }
  0x18   : > { %p5918_p9 = pnand %p5916_p8, %p5906_p7 }
  0x1a   : > { %p5919_p10 = pneg %p5918_p9 }
  0x1c   : > { %p5926_p0 = pnand %p5925_p13, %p5919_p10 }
  0x1e   : > { %5929 = shalt.err (!%p5926_p0)
}
  0x1f   : > { %s6795_s2 = sld [smem:[#allocation18_spill]]  ;;  %s5941_s22 = scalar_lea.vmem %s271_s14, 16 }
  0x20   : > { %p5942_p2 = scmp.ne.s32.totalorder %s271_s14, %s5941_s22  ;;  %s5948_s23 = scalar_lea.vmem %s271_s14, 32 }
  0x21   : > { %p5949_p9 = scmp.lt.s32.totalorder %s271_s14, %s271_s14  ;;  %p5950_p4 = scmp.lt.s32.totalorder %s5948_s23, %s5941_s22 }
  0x22   : > { %p5944_p5 = pnand %p5942_p2, %p5906_p7 }
  0x23   : > { %p5951_p1 = por %p5950_p4, %p5949_p9 }
  0x24   : > { %p5945_p8 = pneg %p5944_p5 }
  0x25   : > { %5803 = dma.hbm_to_vmem [thread:$0]  (!%p6214_p6), %s6795_s2, 16, %s247_s10, [#allocation8]  }
  0x26   : > { %p5952_p11 = pnand %p5951_p1, %p5945_p8 }
  0x28   : > { %5955 = shalt.err (!%p5952_p11)
}
  0x29   : > { %s6796_s4 = sld [smem:[#allocation20_spill]]  ;;  %s5967_s26 = scalar_lea.vmem %s6218_s16, 512 }
  0x2a   : > { %p5968_p10 = scmp.ne.s32.totalorder %s6218_s16, %s5967_s26  ;;  %p5975_p4 = scmp.lt.s32.totalorder %s6218_s16, %s6218_s16 }
  0x2b   : > { %p5976_p1 = scmp.lt.s32.totalorder %s5967_s26, %s5967_s26 }
  0x2c   : > { %p5970_p12 = pnand %p5968_p10, %p5906_p7 }
  0x2d   : > { %p5977_p0 = por %p5976_p1, %p5975_p4 }
  0x2e   : > { %p5971_p13 = pneg %p5970_p12 }
  0x2f   : > { %5809 = dma.hbm_to_vmem [thread:$0]  (!%p6214_p6), %s6796_s4, 16, %s271_s14, [#allocation11]  }
  0x30   : > { %p5978_p2 = pnand %p5977_p0, %p5971_p13 }
  0x32   : > { %5981 = shalt.err (!%p5978_p2)
}
  0x33   : > { %s6113_s9 = smov 128   ;;  %s6114_s10 = smov 8  }
  0x34   : > { %s6797_s3 = sld [smem:[#allocation19_spill]]  ;;  %s6115_s15 = smov [#allocation12]  }
  0x35   : > { %s283_s18 = sshll.u32 %s6115_s15, 4  ;;  %s284_s18 = int_to_ptr.vmem [resolvable:$true] %s283_s18 }
  0x36   : > { %s5993_s19 = scalar_lea.vmem %s284_s18, 512  ;;  %p6001_p11 = scmp.lt.s32.totalorder %s284_s18, %s284_s18 }
  0x37   : > { %p5994_p5 = scmp.ne.s32.totalorder %s284_s18, %s5993_s19  ;;  %p6002_p10 = scmp.lt.s32.totalorder %s5993_s19, %s5993_s19 }
  0x39   : > { %p5996_p8 = pnand %p5994_p5, %p5906_p7  ;;  %p6003_p12 = por %p6002_p10, %p6001_p11 }
  0x3a   : > { %5806 = dma.hbm_to_vmem [thread:$0]  (!%p6214_p6), %s6797_s3, 512, %s6218_s16, [#allocation8], %s6113_s9, %s6113_s9, %s6114_s10  }
  0x3b   : > { %p5997_p9 = pneg %p5996_p8 }
  0x3d   : > { %p6004_p13 = pnand %p6003_p12, %p5997_p9 }
  0x3f   : > { %6007 = shalt.err (!%p6004_p13)
}
  0x40   : > { %5812 = dma.hbm_to_vmem [thread:$0]  (!%p6214_p6), %s6783_s6, 512, %s284_s18, [#allocation11], %s6113_s9, %s6113_s9, %s6114_s10  }
  0x41   : > { %s5228_s16 = sadd.s32 4294967294, %s6108_s30   ;;  %s6261_s17 = sadd.s32 1, %s6108_s30  }
  0x42   : > { %s30_s22 = ssub.s32 %s6108_s30, %s6261_s17  ;;  %s33_s23 = sadd.s32 1, %s6104_s29 }
  0x43   : > { %p31_p7 = scmp.eq.s32.totalorder %s30_s22, 0  ;;  %p40_p4 = scmp.ne.s32.totalorder %s6104_s29, %s6100_s28 }
  0x44   : > { %p41_p1 = scmp.eq.s32.totalorder %s6108_s30, 0  ;;  %p46_p0 = scmp.ne.s32.totalorder %s6100_s28, %s6096_s27 }
  0x45   : > { %s6272_s24 = scalar_select %p31_p7, %s6104_s29, %s33_s23  }
  0x46   : > { %p6274_p2 = por %p41_p1, %p40_p4  ;;  %p6799_p5 = scmp.eq.s32.totalorder %s6200_s11, 0 }
  0x47   : > { %p217_p8 = scmp.eq.s32.totalorder %s6200_s11, 1  ;;  %p223_p9 = scmp.eq.s32.totalorder %s5228_s16, 1 }
  0x48   : > { %p6280_p6 = por %p6799_p5, %p46_p0  ;;  %p5825_p11 = scmp.lt.s32.totalorder %s6108_s30, 2 }
  0x49   : > { %s300_s9 = sand.u32 1, %s6104_s29   ;;  %p6287_p10 = por %p217_p8, %p40_p4 }
  0x4a   : > { %s6800_s26 = scalar_select %p6280_p6, 1, 0 }
  0x4b   : > { %s6801_s10 = scalar_select %p6287_p10, 1, 0 }
  0x4c   : > { %p6291_p12 = por %p223_p9, %p46_p0  ;;  %s5235_s14 = sshll.u32 %s300_s9, 3 }
  0x4d   : > { %s5236_s15 = sshll.u32 %s6108_s30, 7  ;;  %s304_s21 = scalar_lea.vmem [#allocation4], %s5235_s14 }
  0x4e   : > { %s6802_s13 = scalar_select %p6291_p12, 1, 0 }
  0x4f   : > { %s6299_s20 = scalar_lea.hbm %s6777_s0, %s5236_s15  ;;  %s311_s16 = sshll.u32 %s304_s21, 4  ;;  %s312_s16 = int_to_ptr.vmem [resolvable:$true] %s311_s16 }
  0x50   : > { %p6303_p13 = pnand %p5825_p11, %p6274_p2  ;;  %s301_s23 = scalar_lea.sflag [#allocation5], %s300_s9 }
  0x51   : > { %s6008_s2 = scalar_lea.hbm %s6299_s20, 128  ;;  %s6013_s19 = scalar_lea.hbm %s6777_s0, 256 }
  0x52   : > { %p6009_p7 = scmp.ne.s32.totalorder %s6299_s20, %s6008_s2  ;;  %p6010_p4 = pneg %p6303_p13 }
  0x53   : > { %p6014_p5 = scmp.lt.s32.totalorder %s6299_s20, %s6777_s0  ;;  %p6015_p2 = scmp.lt.s32.totalorder %s6013_s19, %s6008_s2 }
  0x54   : > { %p6011_p1 = pnand %p6010_p4, %p6009_p7 }
  0x55   : > { %p6016_p8 = por %p6015_p2, %p6014_p5 }
  0x56   : > { %p6012_p0 = pneg %p6011_p1 }
  0x58   : > { %p6017_p9 = pnand %p6016_p8, %p6012_p0 }
  0x5a   : > { %6020 = shalt.err (!%p6017_p9)
}
  0x5b   : > { %s6021_s25 = scalar_lea.vmem %s312_s16, 128  ;;  %s6116_s9 = smov [#allocation4]  }
  0x5c   : > { %p6022_p11 = scmp.ne.s32.totalorder %s312_s16, %s6021_s25  ;;  %s6026_s3 = sshll.u32 %s6116_s9, 4  ;;  %s6027_s3 = int_to_ptr.vmem [resolvable:$false] %s6026_s3 }
  0x5d   : > { %s6028_s4 = scalar_lea.vmem %s6027_s3, 256  ;;  %p6029_p7 = scmp.lt.s32.totalorder %s312_s16, %s6027_s3 }
  0x5e   : > { %p6024_p12 = pnand %p6022_p11, %p6010_p4  ;;  %p6030_p1 = scmp.lt.s32.totalorder %s6028_s4, %s6021_s25 }
  0x60   : > { %p6025_p10 = pneg %p6024_p12  ;;  %p6031_p6 = por %p6030_p1, %p6029_p7 }
  0x62   : > { %p6032_p3 = pnand %p6031_p6, %p6025_p10 }
  0x64   : > { %6035 = shalt.err (!%p6032_p3)
}
  0x65   : > { %5816 = dma.hbm_to_vmem [thread:$0]  (!%p6303_p13), %s6299_s20, 128, %s312_s16, %s301_s23  }
  0x66   : > { %p6804_p0 = scmp.ne.s32.totalorder %s6793_s12, 0 }
  0x67   : > { %s6324_s2 = sand.u32 (!%p6804_p0), 1, %s6100_s28   ;;  %p6805_p3 = scmp.ne.s32.totalorder (!%p6804_p0), %s6800_s26, 0 }
  0x68   : > { %320 = sbr.rel (%p6804_p0) target bundleno = 3505 (0xdb1), region = 52  ;;  %s5238_s15 = sshll.u32 (!%p6804_p0), %s6324_s2, 3 }
  0x69   : > { %s323_s3 = scalar_lea.sflag (!%p6804_p0), [#allocation5], %s6324_s2  ;;  %s6330_s4 = scalar_lea.vmem (!%p6804_p0), [#allocation4], %s5238_s15 }
  0x6d   : > { %6079 = dma.done.wait (%p6805_p3), %s323_s3, 128  }
  0x6e   : > { %6081 = vsyncadd (%p6805_p3), %s323_s3, 4294967168  ;;  %p6806_p6 = scmp.eq.s32.totalorder %s6200_s11, 0 }
  0x70   : > { %6083 = dma.done.wait (%p6806_p6), [#allocation8], 528   ;;  %p6807_p10 = pmov %p6806_p6 }
  0x71   : > { %p6808_p12 = pmov %p6806_p6 }
  0x72   : > { %6085 = vsyncadd (%p6807_p10), [#allocation8], 4294966768 }
  0x73   : > { %6087 = dma.done.wait (%p6808_p12), [#allocation11], 528   ;;  %p6809_p13 = pmov %p6806_p6 }
  0x74   : > { %vm376_vm0 = vcmask 261120   ;;  %v375_v0 = vld [vmem:[%s6330_s4] sm:$0xff]  ;;  %v6117_v10 = vmov 0.0   ;;  %v407_v14 = vld [vmem:[#allocation9] sm:$0xff]  ;;  %vm6118_vm1 = vmmov 0   ;;  %vm906_vm2 = vcmask 785408  }
  0x75   : > { %6089 = vsyncadd (%p6809_p13), [#allocation11], 4294966768  ;;  %v377_v1 = vsel %vm376_vm0, %v375_v0, 0.0  ;;  %v410_v7 = vld [vmem:[#allocation9 + $0x18] sm:$0xff]  ;;  %v409_v8 = vld [vmem:[#allocation9 + $0x10] sm:$0xff]  ;;  %5419 = vmatprep.subr.mxu1 %v6117_v10  ;;  %5408 = vmatprep.subr.mxu0 %v6117_v10  ;;  %v6355_v15 = vand.u32 4294901760, %v407_v14 }
  0x76   : > { %378 = vadd.xlane.f32.xlu0 %v377_v1  ;;  %v408_v9 = vld [vmem:[#allocation9 + $0x8] sm:$0xff]  ;;  %v6348_v11 = vand.u32 4294901760, %v410_v7  ;;  %v6350_v12 = vand.u32 4294901760, %v409_v8  ;;  %5427 = vmatprep.mubr.msk.f32.mxu1 %vm6118_vm1, %v6117_v10  ;;  %v5244_v36 = vld [vmem:[%s6778_s1] ss:$0 sm:$0xff]  ;;  %s6119_s20 = smov 96  }
  0x77   : > { %v6352_v13 = vand.u32 4294901760, %v408_v9  ;;  %5416 = vmatprep.mubr.msk.f32.mxu0 %vm6118_vm1, %v6117_v10  ;;  %v6372_v19 = vsub.f32 %v407_v14, %v6355_v15  ;;  %v5245_v38 = vld [vmem:[#allocation7] ss:$0 sm:$0xff]  ;;  %v5246_v53 = vld [vmem:[#allocation10] ss:$0 sm:$0xff]  ;;  %vm913_vm3 = vcmask 64512  }
  0x78   : > { %v6362_v16 = vsub.f32 %v410_v7, %v6348_v11  ;;  %v6365_v17 = vsub.f32 %v409_v8, %v6350_v12  ;;  %5409 = vmatpush3.msra.mxu0 %v6348_v11  ;;  %s6120_s23 = smov 64   ;;  %s6121_s18 = smov 88   ;;  %vm2751_vm4 = vcmask 130112   ;;  %vm3676_vm5 = vcmask 195712  }
  0x79   : > { %v6368_v18 = vsub.f32 %v408_v9, %v6352_v13  ;;  %5410 = vmatprep.subr.mxu0 %v6117_v10  ;;  %v548_v23 = vand.u32 4294901760, %v6372_v19  ;;  %s6122_s19 = smov 120   ;;  %s6123_s14 = smov 56   ;;  %vm4601_vm6 = vcmask 261312  }
  0x7a   : > { %v527_v20 = vand.u32 4294901760, %v6362_v16  ;;  %v534_v21 = vand.u32 4294901760, %v6365_v17  ;;  %5411 = vmatpush3.msra.mxu0 %v6350_v12  ;;  %s6124_s21 = smov 80   ;;  %s6125_s25 = smov 112  }
  0x7b   : > { %v541_v22 = vand.u32 4294901760, %v6368_v18  ;;  %5412 = vmatprep.subr.mxu0 %v6117_v10  ;;  %v549_v29 = vsub.f32 %v6372_v19, %v548_v23  ;;  %s6126_s9 = smov 48   ;;  %s6127_s3 = smov 72  }
  0x7c   : > { %v528_v24 = vsub.f32 %v6362_v16, %v527_v20  ;;  %v535_v25 = vsub.f32 %v6365_v17, %v534_v21  ;;  %5413 = vmatpush3.msra.mxu0 %v6352_v13  ;;  %s6128_s12 = smov 104   ;;  %s6129_s26 = smov 40  }
  0x7d   : > { %v542_v26 = vsub.f32 %v6368_v18, %v541_v22  ;;  %5414 = vmatprep.subr.mxu0 %v6117_v10  ;;  %v550_v31 = vand.u32 4294901760, %v549_v29  ;;  %s6131_s16 = smov 16   ;;  %s6132_s22 = smov 24  }
  0x7e   : > { %v529_v27 = vand.u32 4294901760, %v528_v24  ;;  %v536_v28 = vand.u32 4294901760, %v535_v25  ;;  %5415 = vmatpush3.msra.mxu0 %v6355_v15  ;;  %p6810_p5 = scmp.ne.s32.totalorder %s6801_s10, 0 }
  0x7f   : > { %5430 = vmatprep.subr.mxu0 %v6117_v10  ;;  %v543_v30 = vand.u32 4294901760, %v542_v26 }
  0x80   : > { %5420 = vmatpush3.msra.mxu1 %v529_v27 }
  0x81   : > { %5421 = vmatprep.subr.mxu1 %v6117_v10 }
  0x82   : > { %5422 = vmatpush3.msra.mxu1 %v536_v28 }
  0x83   : > { %5423 = vmatprep.subr.mxu1 %v6117_v10 }
  0x84   : > { %5424 = vmatpush3.msra.mxu1 %v543_v30 }
  0x85   : > { %5425 = vmatprep.subr.mxu1 %v6117_v10 }
  0x86   : > { %5426 = vmatpush3.msra.mxu1 %v550_v31 }
  0x87   : > { %5441 = vmatprep.subr.mxu1 %v6117_v10 }
  0xff   : > { %v379_v2 = vpop.xlane.xlu0 %378 }
 0x100   : > { %v381_v3 = vmul.f32 0.03125, %v379_v2 }
 0x102   : > { %v382_v4 = vsub.f32 %v375_v0, %v381_v3 }
 0x104   : > { %v383_v5 = vmul.f32 %v382_v4, %v382_v4 }
 0x106   : > { %v384_v6 = vsel %vm376_vm0, %v383_v5, 0.0 }
 0x107   : > { %385 = vadd.xlane.f32.xlu0 %v384_v6 }
 0x190   : > { %v386_v32 = vpop.xlane.xlu0 %385 }
 0x191   : > { %v387_v33 = vmul.f32 0.03125, %v386_v32 }
 0x193   : > { %v388_v34 = vadd.f32 1e-05, %v387_v33 }
 0x195   : > { %5885 = vrsqrt.f32 %v388_v34 }
 0x1a2   : > { %v5886_v35 = vpop.eup %5885 }
 0x1a3   : > { %v390_v37 = vmul.f32 %v5886_v35, %v382_v4 }
 0x1a5   : > { %v398_v39 = vmul.f32 %v5244_v36, %v390_v37 }
 0x1a7   : > { %v406_v40 = vadd.f32 %v5245_v38, %v398_v39 }
 0x1a9   : > { %v419_v41 = vsel %vm376_vm0, %v406_v40, 0 }
 0x1aa   : > { %v490_v42 = vand.u32 4294901760, %v419_v41 }
 0x1ac   : > { %v491_v43 = vsub.f32 %v419_v41, %v490_v42  ;;  %5428 = vmatmul.mubr.f32.vlgmr.msra.gmra.mxu1 %v490_v42 }
 0x1ad   : > { %5442 = vmatpush3.msra.mxu1 %v6348_v11  ;;  %5449 = vmatprep.mubr.msk.f32.mxu1 %vm6118_vm1, %v6117_v10 }
 0x1ae   : > { %5443 = vmatprep.subr.mxu1 %v6117_v10  ;;  %v492_v44 = vand.u32 4294901760, %v491_v43 }
 0x1af   : > { %5444 = vmatpush3.msra.mxu1 %v6350_v12 }
 0x1b0   : > { %5445 = vmatprep.subr.mxu1 %v6117_v10  ;;  %v493_v45 = vsub.f32 %v491_v43, %v492_v44 }
 0x1b1   : > { %5446 = vmatpush3.msra.mxu1 %v6352_v13 }
 0x1b2   : > { %5447 = vmatprep.subr.mxu1 %v6117_v10  ;;  %v494_v46 = vand.u32 4294901760, %v493_v45 }
 0x1b3   : > { %5448 = vmatpush3.msra.mxu1 %v6355_v15 }
 0x1b4   : > { %5450 = vmatmul.mubr.f32.vlgmr.msra.gmra.mxu1 %v492_v44  ;;  %5463 = vmatprep.subr.mxu1 %v6117_v10 }
 0x1b5   : > { %5417 = vmatmul.mubr.f32.vlgmr.msra.gmra.mxu0 %v494_v46  ;;  %5464 = vmatpush3.msra.mxu1 %v6348_v11 }
 0x1b6   : > { %5431 = vmatpush3.msra.mxu0 %v6362_v16  ;;  %5465 = vmatprep.subr.mxu1 %v6117_v10 }
 0x1b7   : > { %5432 = vmatprep.subr.mxu0 %v6117_v10  ;;  %5466 = vmatpush3.msra.mxu1 %v6350_v12 }
 0x1b8   : > { %5433 = vmatpush3.msra.mxu0 %v6365_v17  ;;  %5467 = vmatprep.subr.mxu1 %v6117_v10 }
 0x1b9   : > { %5434 = vmatprep.subr.mxu0 %v6117_v10  ;;  %5468 = vmatpush3.msra.mxu1 %v6352_v13 }
 0x1ba   : > { %5435 = vmatpush3.msra.mxu0 %v6368_v18  ;;  %5469 = vmatprep.subr.mxu1 %v6117_v10 }
 0x1bb   : > { %5436 = vmatprep.subr.mxu0 %v6117_v10  ;;  %5438 = vmatprep.mubr.msk.f32.mxu0 %vm6118_vm1, %v6117_v10 }
 0x1bc   : > { %5437 = vmatpush3.msra.mxu0 %v6372_v19  ;;  %5470 = vmatpush3.msra.mxu1 %v6355_v15  ;;  %v6480_v19 = vld [vmem:[%s6782_s5] sm:$0xff] }
 0x1bd   : > { %5471 = vmatprep.mubr.msk.f32.mxu1 %vm6118_vm1, %v6117_v10  ;;  %5439 = vmatmul.mubr.f32.vlgmr.msra.gmra.mxu0 %v491_v43 }
 0x1be   : > { %5452 = vmatprep.subr.mxu0 %v6117_v10  ;;  %5472 = vmatmul.mubr.f32.vlgmr.msra.gmra.mxu1 %v490_v42 }
 0x1bf   : > { %5453 = vmatpush3.msra.mxu0 %v527_v20  ;;  %5460 = vmatprep.mubr.msk.f32.mxu0 %vm6118_vm1, %v6117_v10 }
 0x1c0   : > { %5454 = vmatprep.subr.mxu0 %v6117_v10  ;;  %5479 = vmatprep.subr.mxu1 %v6117_v10 }
 0x1c1   : > { %5455 = vmatpush3.msra.mxu0 %v534_v21  ;;  %5481 = vmatprep.mubr.msk.f32.mxu1 %vm6118_vm1, %v6117_v10 }
 0x1c2   : > { %5456 = vmatprep.subr.mxu0 %v6117_v10 }
 0x1c3   : > { %5457 = vmatpush3.msra.mxu0 %v541_v22 }
 0x1c4   : > { %5458 = vmatprep.subr.mxu0 %v6117_v10 }
 0x1c5   : > { %5459 = vmatpush3.msra.mxu0 %v548_v23 }
 0x1c6   : > { %5461 = vmatmul.mubr.f32.vlgmr.msra.gmra.mxu0 %v490_v42  ;;  %5474 = vmatprep.subr.mxu0 %v6117_v10 }
 0x1c7   : > { %5476 = vmatprep.mubr.msk.f32.mxu0 %vm6118_vm1, %v6117_v10 }
 0x26c   : > { %v587_v47 = vpop.f32.mrf.mxu1 }
 0x26e   : > { %v5429_v48 = vpop.f32.mrf.mxu1 }
 0x274   : > { %v744_v49 = vpop.f32.mrf.mxu1 }
 0x275   : > { %v496_v50 = vpop.f32.mrf.mxu0 }
 0x276   : > { %v5451_v51 = vpop.f32.mrf.mxu1  ;;  %v497_v54 = vadd.f32 %v5246_v53, %v496_v50 }
 0x277   : > { %v5418_v52 = vpop.f32.mrf.mxu0 }
 0x278   : > { %v588_v57 = vadd.f32 %v587_v47, %v497_v54 }
 0x27d   : > { %v667_v55 = vpop.f32.mrf.mxu0 }
 0x27e   : > { %v902_v56 = vpop.f32.mrf.mxu1  ;;  %v668_v60 = vadd.f32 %v667_v55, %v588_v57 }
 0x27f   : > { %v5440_v58 = vpop.f32.mrf.mxu0 }
 0x280   : > { %v5473_v59 = vpop.f32.mrf.mxu1  ;;  %v745_v61 = vadd.f32 %v744_v49, %v668_v60 }
 0x286   : > { %v827_v62 = vpop.f32.mrf.mxu0 }
 0x287   : > { %v828_v63 = vadd.f32 %v827_v62, %v745_v61 }
 0x288   : > { %v5462_v0 = vpop.f32.mrf.mxu0 }
 0x289   : > { %v903_v1 = vadd.f32 %v902_v56, %v828_v63 }
 0x28b   : > { %907 = vst.msk [vmem:[#allocation2] sm:$0xff] %vm906_vm2, %v903_v1 }
 0x292   : > { %v6453_v2 = vld [vmem:[#allocation2] sm:$0xff] }
 0x293   : > { %911 = vrot.lane.b32.xlu1 %v6453_v2, %s6119_s20  ;;  %v914_v3 = vsel %vm913_vm3, %v6453_v2, 0  ;;  %s6130_s20 = smov 8  }
 0x294   : > { %v984_v4 = vand.u32 4294901760, %v914_v3 }
 0x296   : > { %v985_v5 = vsub.f32 %v914_v3, %v984_v4 }
 0x298   : > { %v986_v6 = vand.u32 4294901760, %v985_v5 }
 0x29a   : > { %v987_v9 = vsub.f32 %v985_v5, %v986_v6 }
 0x29c   : > { %v988_v13 = vand.u32 4294901760, %v987_v9 }
 0x305   : > { %v912_v7 = vpop.permute.xlu1 %911 }
 0x306   : > { %v916_v8 = vsel %vm913_vm3, %v912_v7, 0 }
 0x307   : > { %v949_v11 = vand.u32 4294901760, %v916_v8 }
 0x309   : > { %v1026_v12 = vsub.f32 %v916_v8, %v949_v11  ;;  %5475 = vmatpush3.xpose.msra.mxu0 %v949_v11 }
 0x30a   : > { %5484 = vmatprep.subr.mxu0 %v6117_v10 }
 0x30b   : > { %v1027_v14 = vand.u32 4294901760, %v1026_v12 }
 0x30c   : > { %5477 = vmatmul.mubr.f32.vlgmr.msra.gmra.mxu0 %v988_v13 }
 0x30d   : > { %v1028_v15 = vsub.f32 %v1026_v12, %v1027_v14  ;;  %5485 = vmatpush3.xpose.msra.mxu0 %v1026_v12  ;;  %5486 = vmatprep.mubr.msk.f32.mxu0 %vm6118_vm1, %v6117_v10 }
 0x30e   : > { %5494 = vmatprep.subr.mxu0 %v6117_v10 }
 0x30f   : > { %v1029_v16 = vand.u32 4294901760, %v1028_v15 }
 0x310   : > { %5487 = vmatmul.mubr.f32.vlgmr.msra.gmra.mxu0 %v985_v5 }
 0x311   : > { %5480 = vmatpush3.xpose.msra.mxu1 %v1029_v16  ;;  %5495 = vmatpush3.xpose.msra.mxu0 %v1027_v14 }
 0x312   : > { %5496 = vmatprep.mubr.msk.f32.mxu0 %vm6118_vm1, %v6117_v10  ;;  %5489 = vmatprep.subr.mxu1 %v6117_v10 }
 0x313   : > { %5504 = vmatprep.subr.mxu0 %v6117_v10 }
 0x314   : > { %5482 = vmatmul.mubr.f32.vlgmr.msra.gmra.mxu1 %v984_v4  ;;  %5497 = vmatmul.mubr.f32.vlgmr.msra.gmra.mxu0 %v984_v4 }
 0x315   : > { %5490 = vmatpush3.xpose.msra.mxu1 %v949_v11  ;;  %5491 = vmatprep.mubr.msk.f32.mxu1 %vm6118_vm1, %v6117_v10 }
 0x316   : > { %5499 = vmatprep.subr.mxu1 %v6117_v10  ;;  %5506 = vmatprep.mubr.msk.f32.mxu0 %vm6118_vm1, %v6117_v10 }
 0x318   : > { %5492 = vmatmul.mubr.f32.vlgmr.msra.gmra.mxu1 %v986_v6 }
 0x319   : > { %5500 = vmatpush3.xpose.msra.mxu1 %v949_v11  ;;  %5501 = vmatprep.mubr.msk.f32.mxu1 %vm6118_vm1, %v6117_v10 }
 0x31a   : > { %5509 = vmatprep.subr.mxu1 %v6117_v10 }
 0x31c   : > { %5502 = vmatmul.mubr.f32.vlgmr.msra.gmra.mxu1 %v984_v4 }
 0x31d   : > { %5511 = vmatprep.mubr.msk.f32.mxu1 %vm6118_vm1, %v6117_v10 }
 0x3cc   : > { %v990_v17 = vpop.f32.mrf.mxu0 }
 0x3cd   : > { %v991_v22 = vadd.f32 %v990_v17, %v6480_v19 }
 0x3ce   : > { %v5478_v18 = vpop.f32.mrf.mxu0 }
 0x3d0   : > { %v1140_v20 = vpop.f32.mrf.mxu0 }
 0x3d2   : > { %v5488_v21 = vpop.f32.mrf.mxu0 }
 0x3d4   : > { %v1066_v23 = vpop.f32.mrf.mxu1  ;;  %v1288_v24 = vpop.f32.mrf.mxu0 }
 0x3d5   : > { %v1067_v25 = vadd.f32 %v1066_v23, %v991_v22 }
 0x3d6   : > { %v5483_v26 = vpop.f32.mrf.mxu1  ;;  %v5498_v27 = vpop.f32.mrf.mxu0 }
 0x3d7   : > { %v1141_v28 = vadd.f32 %v1140_v20, %v1067_v25 }
 0x3d8   : > { %v1214_v29 = vpop.f32.mrf.mxu1 }
 0x3d9   : > { %v1215_v30 = vadd.f32 %v1214_v29, %v1141_v28 }
 0x3da   : > { %v5493_v31 = vpop.f32.mrf.mxu1 }
 0x3db   : > { %v1289_v32 = vadd.f32 %v1288_v24, %v1215_v30 }
 0x3dc   : > { %v1360_v33 = vpop.f32.mrf.mxu1 }
 0x3dd   : > { %v1361_v34 = vadd.f32 %v1360_v33, %v1289_v32 }
 0x3de   : > { %v5503_v35 = vpop.f32.mrf.mxu1 }
 0x3df   : > { %v1364_v36 = vsel %vm913_vm3, %v1361_v34, -inf }
 0x3e0   : > { %1365 = vmax.xlane.f32.xlu1 %v1364_v36 }
 0x469   : > { %v1366_v37 = vpop.xlane.xlu1 %1365 }
 0x46a   : > { %v1367_v38 = vsub.f32 %v1361_v34, %v1366_v37 }
 0x46c   : > { %v1368_v39 = vmul.f32 1.442695, %v1367_v38 }
 0x46e   : > { %5887 = vpow2.f32 %v1368_v39 }
 0x47b   : > { %v5888_v40 = vpop.eup %5887 }
 0x47c   : > { %v1370_v41 = vsel %vm913_vm3, %v5888_v40, 0.0 }
 0x47d   : > { %1371 = vadd.xlane.f32.xlu0 %v1370_v41 }
 0x493   : > { %1375 = vrot.lane.b32.xlu0 %v6453_v2, %s6120_s23 }
 0x497   : > { %1832 = vrot.lane.b32.xlu0 %v6453_v2, %s6121_s18 }
 0x49b   : > { %1830 = vrot.lane.b32.xlu0 %v6453_v2, %s6122_s19  ;;  %s5249_s19 = sshll.u32 %s6200_s11, 7  ;;  %s6133_s11 = smov [#allocation13]  }
 0x506   : > { %v1372_v42 = vpop.xlane.xlu0 %1371 }
 0x507   : > { %5889 = vrcp.f32 %v1372_v42 }
 0x50a   : > { %v1376_v43 = vpop.permute.xlu0 %1375 }
 0x50b   : > { %v1412_v44 = vand.u32 4294901760, %v1376_v43 }
 0x50d   : > { %v1489_v45 = vsub.f32 %v1376_v43, %v1412_v44  ;;  %5505 = vmatpush3.msra.mxu0 %v1412_v44 }
 0x50e   : > { %v1833_v46 = vpop.permute.xlu0 %1832  ;;  %5514 = vmatprep.subr.mxu0 %v6117_v10 }
 0x50f   : > { %v1490_v47 = vand.u32 4294901760, %v1489_v45  ;;  %v1836_v48 = vsel %vm913_vm3, %v1833_v46, 0 }
 0x510   : > { %v1869_v50 = vand.u32 4294901760, %v1836_v48 }
 0x511   : > { %v1491_v49 = vsub.f32 %v1489_v45, %v1490_v47 }
 0x512   : > { %v1946_v53 = vsub.f32 %v1836_v48, %v1869_v50  ;;  %v1831_v55 = vpop.permute.xlu0 %1830 }
 0x513   : > { %v1492_v51 = vand.u32 4294901760, %v1491_v49  ;;  %v1834_v59 = vsel %vm913_vm3, %v1831_v55, 0 }
 0x514   : > { %v5890_v52 = vpop.eup %5889  ;;  %v1947_v58 = vand.u32 4294901760, %v1946_v53  ;;  %v1904_v61 = vand.u32 4294901760, %v1834_v59 }
 0x515   : > { %5510 = vmatpush3.msra.mxu1 %v1492_v51  ;;  %v1374_v54 = vmul.f32 %v5890_v52, %v5888_v40 }
 0x516   : > { %5519 = vmatprep.subr.mxu1 %v6117_v10  ;;  %v1948_v63 = vsub.f32 %v1946_v53, %v1947_v58  ;;  %v1905_v1 = vsub.f32 %v1834_v59, %v1904_v61 }
 0x517   : > { %v1379_v56 = vsel %vm913_vm3, %v1374_v54, 0 }
 0x518   : > { %v1447_v57 = vand.u32 4294901760, %v1379_v56  ;;  %v1949_v4 = vand.u32 4294901760, %v1948_v63  ;;  %v1906_v5 = vand.u32 4294901760, %v1905_v1 }
 0x51a   : > { %v1448_v60 = vsub.f32 %v1379_v56, %v1447_v57  ;;  %5512 = vmatmul.mubr.f32.vlgmr.msra.gmra.mxu1 %v1447_v57  ;;  %v1907_v6 = vsub.f32 %v1905_v1, %v1906_v5 }
 0x51b   : > { %5520 = vmatpush3.msra.mxu1 %v1412_v44  ;;  %5521 = vmatprep.mubr.msk.f32.mxu1 %vm6118_vm1, %v6117_v10 }
 0x51c   : > { %5529 = vmatprep.subr.mxu1 %v6117_v10  ;;  %v1449_v62 = vand.u32 4294901760, %v1448_v60  ;;  %v1908_v7 = vand.u32 4294901760, %v1907_v6 }
 0x51e   : > { %5522 = vmatmul.mubr.f32.vlgmr.msra.gmra.mxu1 %v1449_v62  ;;  %v1450_v0 = vsub.f32 %v1448_v60, %v1449_v62 }
 0x51f   : > { %5530 = vmatpush3.msra.mxu1 %v1412_v44  ;;  %5531 = vmatprep.mubr.msk.f32.mxu1 %vm6118_vm1, %v6117_v10 }
 0x520   : > { %5539 = vmatprep.subr.mxu1 %v6117_v10  ;;  %v1451_v3 = vand.u32 4294901760, %v1450_v0 }
 0x522   : > { %5507 = vmatmul.mubr.f32.vlgmr.msra.gmra.mxu0 %v1451_v3  ;;  %5532 = vmatmul.mubr.f32.vlgmr.msra.gmra.mxu1 %v1447_v57 }
 0x523   : > { %5515 = vmatpush3.msra.mxu0 %v1489_v45  ;;  %5540 = vmatpush3.xpose.msra.mxu1 %v1949_v4 }
 0x524   : > { %5516 = vmatprep.mubr.msk.f32.mxu0 %vm6118_vm1, %v6117_v10  ;;  %5524 = vmatprep.subr.mxu0 %v6117_v10 }
 0x525   : > { %5541 = vmatprep.mubr.msk.f32.mxu1 %vm6118_vm1, %v6117_v10  ;;  %5549 = vmatprep.subr.mxu1 %v6117_v10 }
 0x526   : > { %5517 = vmatmul.mubr.f32.vlgmr.msra.gmra.mxu0 %v1448_v60  ;;  %5542 = vmatmul.mubr.f32.vlgmr.msra.gmra.mxu1 %v1904_v61 }
 0x527   : > { %5525 = vmatpush3.msra.mxu0 %v1490_v47  ;;  %5550 = vmatpush3.xpose.msra.mxu1 %v1869_v50 }
 0x528   : > { %5526 = vmatprep.mubr.msk.f32.mxu0 %vm6118_vm1, %v6117_v10  ;;  %5534 = vmatprep.subr.mxu0 %v6117_v10 }
 0x529   : > { %5551 = vmatprep.mubr.msk.f32.mxu1 %vm6118_vm1, %v6117_v10  ;;  %5559 = vmatprep.subr.mxu1 %v6117_v10 }
 0x52a   : > { %5527 = vmatmul.mubr.f32.vlgmr.msra.gmra.mxu0 %v1447_v57  ;;  %5552 = vmatmul.mubr.f32.vlgmr.msra.gmra.mxu1 %v1906_v5 }
 0x52b   : > { %5535 = vmatpush3.xpose.msra.mxu0 %v1869_v50  ;;  %5560 = vmatpush3.xpose.msra.mxu1 %v1869_v50 }
 0x52c   : > { %5536 = vmatprep.mubr.msk.f32.mxu0 %vm6118_vm1, %v6117_v10  ;;  %5544 = vmatprep.subr.mxu0 %v6117_v10 }
 0x52d   : > { %5561 = vmatprep.mubr.msk.f32.mxu1 %vm6118_vm1, %v6117_v10  ;;  %5569 = vmatprep.subr.mxu1 %v6117_v10 }
 0x52e   : > { %5537 = vmatmul.mubr.f32.vlgmr.msra.gmra.mxu0 %v1908_v7  ;;  %5562 = vmatmul.mubr.f32.vlgmr.msra.gmra.mxu1 %v1904_v61 }
 0x52f   : > { %5545 = vmatpush3.xpose.msra.mxu0 %v1946_v53  ;;  %5546 = vmatprep.mubr.msk.f32.mxu0 %vm6118_vm1, %v6117_v10 }
 0x530   : > { %5554 = vmatprep.subr.mxu0 %v6117_v10  ;;  %5571 = vmatprep.mubr.msk.f32.mxu1 %vm6118_vm1, %v6117_v10 }
 0x532   : > { %5547 = vmatmul.mubr.f32.vlgmr.msra.gmra.mxu0 %v1905_v1 }
 0x533   : > { %5555 = vmatpush3.xpose.msra.mxu0 %v1947_v58  ;;  %5556 = vmatprep.mubr.msk.f32.mxu0 %vm6118_vm1, %v6117_v10 }
 0x534   : > { %5564 = vmatprep.subr.mxu0 %v6117_v10 }
 0x536   : > { %5557 = vmatmul.mubr.f32.vlgmr.msra.gmra.mxu0 %v1904_v61 }
 0x537   : > { %5566 = vmatprep.mubr.msk.f32.mxu0 %vm6118_vm1, %v6117_v10 }
 0x5da   : > { %v1529_v8 = vpop.f32.mrf.mxu1 }
 0x5dc   : > { %v5513_v9 = vpop.f32.mrf.mxu1 }
 0x5de   : > { %v1677_v11 = vpop.f32.mrf.mxu1 }
 0x5e0   : > { %v5523_v12 = vpop.f32.mrf.mxu1 }
 0x5e2   : > { %v1453_v13 = vpop.f32.mrf.mxu0  ;;  %v1823_v14 = vpop.f32.mrf.mxu1 }
 0x5e3   : > { %v1530_v17 = vadd.f32 %v1529_v8, %v1453_v13 }
 0x5e4   : > { %v5508_v15 = vpop.f32.mrf.mxu0  ;;  %v5533_v16 = vpop.f32.mrf.mxu1 }
 0x5e6   : > { %v1603_v18 = vpop.f32.mrf.mxu0  ;;  %v1986_v20 = vpop.f32.mrf.mxu1 }
 0x5e7   : > { %v1604_v21 = vadd.f32 %v1603_v18, %v1530_v17 }
 0x5e8   : > { %v5518_v22 = vpop.f32.mrf.mxu0  ;;  %v5543_v23 = vpop.f32.mrf.mxu1 }
 0x5e9   : > { %v1678_v24 = vadd.f32 %v1677_v11, %v1604_v21 }
 0x5ea   : > { %v1751_v25 = vpop.f32.mrf.mxu0  ;;  %v2134_v26 = vpop.f32.mrf.mxu1 }
 0x5eb   : > { %v1752_v27 = vadd.f32 %v1751_v25, %v1678_v24 }
 0x5ec   : > { %v5528_v28 = vpop.f32.mrf.mxu0  ;;  %v5553_v29 = vpop.f32.mrf.mxu1 }
 0x5ed   : > { %v1824_v30 = vadd.f32 %v1823_v14, %v1752_v27 }
 0x5ee   : > { %v1910_v31 = vpop.f32.mrf.mxu0  ;;  %v2280_v32 = vpop.f32.mrf.mxu1 }
 0x5ef   : > { %1827 = vst.msk [vmem:[#allocation3] sm:$0xff] %vm913_vm3, %v1824_v30  ;;  %v1911_v33 = vadd.f32 %v1910_v31, %v6480_v19 }
 0x5f0   : > { %v5538_v34 = vpop.f32.mrf.mxu0  ;;  %v5563_v35 = vpop.f32.mrf.mxu1 }
 0x5f1   : > { %v1987_v36 = vadd.f32 %v1986_v20, %v1911_v33 }
 0x5f2   : > { %v2060_v37 = vpop.f32.mrf.mxu0 }
 0x5f3   : > { %v2061_v38 = vadd.f32 %v2060_v37, %v1987_v36 }
 0x5f4   : > { %v5548_v39 = vpop.f32.mrf.mxu0 }
 0x5f5   : > { %v2135_v40 = vadd.f32 %v2134_v26, %v2061_v38 }
 0x5f6   : > { %v2208_v41 = vpop.f32.mrf.mxu0 }
 0x5f7   : > { %v2209_v42 = vadd.f32 %v2208_v41, %v2135_v40 }
 0x5f8   : > { %v5558_v43 = vpop.f32.mrf.mxu0 }
 0x5f9   : > { %v2281_v44 = vadd.f32 %v2280_v32, %v2209_v42 }
 0x5fb   : > { %v2284_v45 = vsel %vm913_vm3, %v2281_v44, -inf }
 0x5fc   : > { %2285 = vmax.xlane.f32.xlu1 %v2284_v45 }
 0x60d   : > { %2295 = vrot.lane.b32.xlu1 %v6453_v2, %s6123_s14  ;;  %s374_s14 = scalar_lea.vmem [#allocation13], %s5238_s15 }
 0x611   : > { %2757 = vrot.lane.b32.xlu1 %v6453_v2, %s6124_s21  ;;  %s5120_s21 = sshll.u32 %s374_s14, 4  ;;  %s5121_s21 = int_to_ptr.vmem [resolvable:$true] %s5120_s21 }
 0x615   : > { %2755 = vrot.lane.b32.xlu1 %v6453_v2, %s6125_s25 }
 0x685   : > { %v2286_v46 = vpop.xlane.xlu1 %2285 }
 0x686   : > { %v2287_v47 = vsub.f32 %v2281_v44, %v2286_v46 }
 0x688   : > { %v2288_v48 = vmul.f32 1.442695, %v2287_v47 }
 0x689   : > { %v2296_v49 = vpop.permute.xlu1 %2295 }
 0x68a   : > { %5891 = vpow2.f32 %v2288_v48  ;;  %v2332_v50 = vand.u32 4294901760, %v2296_v49 }
 0x68c   : > { %v2409_v51 = vsub.f32 %v2296_v49, %v2332_v50  ;;  %5565 = vmatpush3.msra.mxu0 %v2332_v50 }
 0x68d   : > { %5574 = vmatprep.subr.mxu0 %v6117_v10  ;;  %v2758_v58 = vpop.permute.xlu1 %2757 }
 0x68e   : > { %v2410_v52 = vand.u32 4294901760, %v2409_v51  ;;  %v2761_v59 = vsel %vm913_vm3, %v2758_v58, 0 }
 0x68f   : > { %v2794_v60 = vand.u32 4294901760, %v2761_v59 }
 0x690   : > { %v2411_v53 = vsub.f32 %v2409_v51, %v2410_v52 }
 0x691   : > { %v2871_v62 = vsub.f32 %v2761_v59, %v2794_v60  ;;  %v2756_v0 = vpop.permute.xlu1 %2755 }
 0x692   : > { %v2412_v54 = vand.u32 4294901760, %v2411_v53  ;;  %v2759_v5 = vsel %vm913_vm3, %v2756_v0, 0 }
 0x693   : > { %v2872_v4 = vand.u32 4294901760, %v2871_v62  ;;  %v2829_v7 = vand.u32 4294901760, %v2759_v5 }
 0x694   : > { %5570 = vmatpush3.msra.mxu1 %v2412_v54 }
 0x695   : > { %5579 = vmatprep.subr.mxu1 %v6117_v10  ;;  %v2873_v9 = vsub.f32 %v2871_v62, %v2872_v4  ;;  %v2830_v12 = vsub.f32 %v2759_v5, %v2829_v7 }
 0x697   : > { %v5892_v55 = vpop.eup %5891  ;;  %v2874_v14 = vand.u32 4294901760, %v2873_v9  ;;  %v2831_v15 = vand.u32 4294901760, %v2830_v12 }
 0x698   : > { %v2290_v56 = vsel %vm913_vm3, %v5892_v55, 0.0 }
 0x699   : > { %2291 = vadd.xlane.f32.xlu0 %v2290_v56  ;;  %v2832_v16 = vsub.f32 %v2830_v12, %v2831_v15 }
 0x69b   : > { %v2833_v17 = vand.u32 4294901760, %v2832_v16 }
 0x722   : > { %v2292_v57 = vpop.xlane.xlu0 %2291 }
 0x723   : > { %5893 = vrcp.f32 %v2292_v57 }
 0x730   : > { %v5894_v61 = vpop.eup %5893 }
 0x731   : > { %v2294_v63 = vmul.f32 %v5894_v61, %v5892_v55 }
 0x733   : > { %v2299_v1 = vsel %vm913_vm3, %v2294_v63, 0 }
 0x734   : > { %v2367_v3 = vand.u32 4294901760, %v2299_v1 }
 0x736   : > { %v2368_v6 = vsub.f32 %v2299_v1, %v2367_v3  ;;  %5572 = vmatmul.mubr.f32.vlgmr.msra.gmra.mxu1 %v2367_v3 }
 0x737   : > { %5580 = vmatpush3.msra.mxu1 %v2332_v50  ;;  %5581 = vmatprep.mubr.msk.f32.mxu1 %vm6118_vm1, %v6117_v10 }
 0x738   : > { %5589 = vmatprep.subr.mxu1 %v6117_v10  ;;  %v2369_v8 = vand.u32 4294901760, %v2368_v6 }
 0x73a   : > { %5582 = vmatmul.mubr.f32.vlgmr.msra.gmra.mxu1 %v2369_v8  ;;  %v2370_v11 = vsub.f32 %v2368_v6, %v2369_v8 }
 0x73b   : > { %5590 = vmatpush3.msra.mxu1 %v2332_v50  ;;  %5591 = vmatprep.mubr.msk.f32.mxu1 %vm6118_vm1, %v6117_v10 }
 0x73c   : > { %5599 = vmatprep.subr.mxu1 %v6117_v10  ;;  %v2371_v13 = vand.u32 4294901760, %v2370_v11 }
 0x73e   : > { %5567 = vmatmul.mubr.f32.vlgmr.msra.gmra.mxu0 %v2371_v13  ;;  %5592 = vmatmul.mubr.f32.vlgmr.msra.gmra.mxu1 %v2367_v3 }
 0x73f   : > { %5575 = vmatpush3.msra.mxu0 %v2409_v51  ;;  %5600 = vmatpush3.xpose.msra.mxu1 %v2874_v14 }
 0x740   : > { %5576 = vmatprep.mubr.msk.f32.mxu0 %vm6118_vm1, %v6117_v10  ;;  %5584 = vmatprep.subr.mxu0 %v6117_v10 }
 0x741   : > { %5601 = vmatprep.mubr.msk.f32.mxu1 %vm6118_vm1, %v6117_v10  ;;  %5609 = vmatprep.subr.mxu1 %v6117_v10 }
 0x742   : > { %5577 = vmatmul.mubr.f32.vlgmr.msra.gmra.mxu0 %v2368_v6  ;;  %5602 = vmatmul.mubr.f32.vlgmr.msra.gmra.mxu1 %v2829_v7 }
 0x743   : > { %5585 = vmatpush3.msra.mxu0 %v2410_v52  ;;  %5610 = vmatpush3.xpose.msra.mxu1 %v2794_v60 }
 0x744   : > { %5586 = vmatprep.mubr.msk.f32.mxu0 %vm6118_vm1, %v6117_v10  ;;  %5594 = vmatprep.subr.mxu0 %v6117_v10 }
 0x745   : > { %5611 = vmatprep.mubr.msk.f32.mxu1 %vm6118_vm1, %v6117_v10  ;;  %5619 = vmatprep.subr.mxu1 %v6117_v10 }
 0x746   : > { %5587 = vmatmul.mubr.f32.vlgmr.msra.gmra.mxu0 %v2367_v3  ;;  %5612 = vmatmul.mubr.f32.vlgmr.msra.gmra.mxu1 %v2831_v15 }
 0x747   : > { %5595 = vmatpush3.xpose.msra.mxu0 %v2794_v60  ;;  %5620 = vmatpush3.xpose.msra.mxu1 %v2794_v60 }
 0x748   : > { %5596 = vmatprep.mubr.msk.f32.mxu0 %vm6118_vm1, %v6117_v10  ;;  %5604 = vmatprep.subr.mxu0 %v6117_v10 }
 0x749   : > { %5621 = vmatprep.mubr.msk.f32.mxu1 %vm6118_vm1, %v6117_v10  ;;  %5629 = vmatprep.subr.mxu1 %v6117_v10 }
 0x74a   : > { %5597 = vmatmul.mubr.f32.vlgmr.msra.gmra.mxu0 %v2833_v17  ;;  %5622 = vmatmul.mubr.f32.vlgmr.msra.gmra.mxu1 %v2829_v7 }
 0x74b   : > { %5605 = vmatpush3.xpose.msra.mxu0 %v2871_v62  ;;  %5606 = vmatprep.mubr.msk.f32.mxu0 %vm6118_vm1, %v6117_v10 }
 0x74c   : > { %5614 = vmatprep.subr.mxu0 %v6117_v10  ;;  %5631 = vmatprep.mubr.msk.f32.mxu1 %vm6118_vm1, %v6117_v10 }
 0x74e   : > { %5607 = vmatmul.mubr.f32.vlgmr.msra.gmra.mxu0 %v2830_v12 }
 0x74f   : > { %5615 = vmatpush3.xpose.msra.mxu0 %v2872_v4  ;;  %5616 = vmatprep.mubr.msk.f32.mxu0 %vm6118_vm1, %v6117_v10 }
 0x750   : > { %5624 = vmatprep.subr.mxu0 %v6117_v10 }
 0x752   : > { %5617 = vmatmul.mubr.f32.vlgmr.msra.gmra.mxu0 %v2829_v7 }
 0x753   : > { %5626 = vmatprep.mubr.msk.f32.mxu0 %vm6118_vm1, %v6117_v10 }
 0x7f6   : > { %v2449_v18 = vpop.f32.mrf.mxu1 }
 0x7f8   : > { %v5573_v20 = vpop.f32.mrf.mxu1 }
 0x7fa   : > { %v2597_v21 = vpop.f32.mrf.mxu1 }
 0x7fc   : > { %v5583_v22 = vpop.f32.mrf.mxu1 }
 0x7fe   : > { %v2373_v23 = vpop.f32.mrf.mxu0  ;;  %v2743_v24 = vpop.f32.mrf.mxu1 }
 0x7ff   : > { %v2450_v25 = vadd.f32 %v2449_v18, %v2373_v23 }
 0x800   : > { %v5568_v26 = vpop.f32.mrf.mxu0  ;;  %v5593_v27 = vpop.f32.mrf.mxu1 }
 0x802   : > { %v2523_v28 = vpop.f32.mrf.mxu0  ;;  %v2911_v29 = vpop.f32.mrf.mxu1 }
 0x803   : > { %v2524_v30 = vadd.f32 %v2523_v28, %v2450_v25 }
 0x804   : > { %v5578_v31 = vpop.f32.mrf.mxu0  ;;  %v5603_v32 = vpop.f32.mrf.mxu1 }
 0x805   : > { %v2598_v33 = vadd.f32 %v2597_v21, %v2524_v30 }
 0x806   : > { %v2671_v34 = vpop.f32.mrf.mxu0  ;;  %v3059_v35 = vpop.f32.mrf.mxu1 }
 0x807   : > { %v2672_v36 = vadd.f32 %v2671_v34, %v2598_v33 }
 0x808   : > { %v5588_v37 = vpop.f32.mrf.mxu0  ;;  %v5613_v38 = vpop.f32.mrf.mxu1 }
 0x809   : > { %v6573_v39 = vadd.f32 %v2743_v24, %v2672_v36 }
 0x80a   : > { %v2835_v40 = vpop.f32.mrf.mxu0  ;;  %v3205_v41 = vpop.f32.mrf.mxu1 }
 0x80b   : > { %v2836_v42 = vadd.f32 %v2835_v40, %v6480_v19 }
 0x80c   : > { %v5598_v43 = vpop.f32.mrf.mxu0  ;;  %v5623_v44 = vpop.f32.mrf.mxu1 }
 0x80d   : > { %v2912_v45 = vadd.f32 %v2911_v29, %v2836_v42 }
 0x80e   : > { %v2985_v46 = vpop.f32.mrf.mxu0 }
 0x80f   : > { %v2986_v47 = vadd.f32 %v2985_v46, %v2912_v45 }
 0x810   : > { %v5608_v48 = vpop.f32.mrf.mxu0 }
 0x811   : > { %v3060_v49 = vadd.f32 %v3059_v35, %v2986_v47 }
 0x812   : > { %v3133_v50 = vpop.f32.mrf.mxu0 }
 0x813   : > { %v3134_v51 = vadd.f32 %v3133_v50, %v3060_v49 }
 0x814   : > { %v5618_v52 = vpop.f32.mrf.mxu0 }
 0x815   : > { %v3206_v53 = vadd.f32 %v3205_v41, %v3134_v51 }
 0x817   : > { %v3209_v54 = vsel %vm913_vm3, %v3206_v53, -inf }
 0x818   : > { %3210 = vmax.xlane.f32.xlu1 %v3209_v54 }
 0x8a1   : > { %v3211_v55 = vpop.xlane.xlu1 %3210 }
 0x8a2   : > { %v3212_v56 = vsub.f32 %v3206_v53, %v3211_v55 }
 0x8a4   : > { %v3213_v57 = vmul.f32 1.442695, %v3212_v56 }
 0x8a6   : > { %5895 = vpow2.f32 %v3213_v57 }
 0x8b3   : > { %v5896_v58 = vpop.eup %5895 }
 0x8b4   : > { %v3215_v59 = vsel %vm913_vm3, %v5896_v58, 0.0 }
 0x8b5   : > { %3216 = vadd.xlane.f32.xlu0 %v3215_v59 }
 0x8cb   : > { %3220 = vrot.lane.b32.xlu0 %v6453_v2, %s6126_s9 }
 0x8cf   : > { %3682 = vrot.lane.b32.xlu0 %v6453_v2, %s6127_s3  ;;  %s5118_s3 = scalar_lea.hbm %s6785_s8, %s5249_s19 }
 0x8d3   : > { %3680 = vrot.lane.b32.xlu0 %v6453_v2, %s6128_s12  ;;  %s5107_s12 = scalar_lea.sflag [#allocation6], %s6324_s2 }
 0x93e   : > { %v3217_v60 = vpop.xlane.xlu0 %3216 }
 0x93f   : > { %5897 = vrcp.f32 %v3217_v60 }
 0x942   : > { %v3221_v61 = vpop.permute.xlu0 %3220 }
 0x943   : > { %v3257_v62 = vand.u32 4294901760, %v3221_v61 }
 0x945   : > { %v3334_v63 = vsub.f32 %v3221_v61, %v3257_v62  ;;  %5625 = vmatpush3.msra.mxu0 %v3257_v62 }
 0x946   : > { %v3683_v0 = vpop.permute.xlu0 %3682  ;;  %5634 = vmatprep.subr.mxu0 %v6117_v10 }
 0x947   : > { %v3335_v1 = vand.u32 4294901760, %v3334_v63  ;;  %v3686_v3 = vsel %vm913_vm3, %v3683_v0, 0 }
 0x948   : > { %v3719_v5 = vand.u32 4294901760, %v3686_v3 }
 0x949   : > { %v3336_v4 = vsub.f32 %v3334_v63, %v3335_v1 }
 0x94a   : > { %v3796_v8 = vsub.f32 %v3686_v3, %v3719_v5  ;;  %v3681_v11 = vpop.permute.xlu0 %3680 }
 0x94b   : > { %v3337_v6 = vand.u32 4294901760, %v3336_v4  ;;  %v3684_v15 = vsel %vm913_vm3, %v3681_v11, 0 }
 0x94c   : > { %v5898_v7 = vpop.eup %5897  ;;  %v3797_v14 = vand.u32 4294901760, %v3796_v8  ;;  %v3754_v17 = vand.u32 4294901760, %v3684_v15 }
 0x94d   : > { %5630 = vmatpush3.msra.mxu1 %v3337_v6  ;;  %v3219_v9 = vmul.f32 %v5898_v7, %v5896_v58 }
 0x94e   : > { %5639 = vmatprep.subr.mxu1 %v6117_v10  ;;  %v3798_v20 = vsub.f32 %v3796_v8, %v3797_v14  ;;  %v3755_v22 = vsub.f32 %v3684_v15, %v3754_v17 }
 0x94f   : > { %v3224_v12 = vsel %vm913_vm3, %v3219_v9, 0 }
 0x950   : > { %v3292_v13 = vand.u32 4294901760, %v3224_v12  ;;  %v3799_v24 = vand.u32 4294901760, %v3798_v20  ;;  %v3756_v25 = vand.u32 4294901760, %v3755_v22 }
 0x952   : > { %v3293_v16 = vsub.f32 %v3224_v12, %v3292_v13  ;;  %5632 = vmatmul.mubr.f32.vlgmr.msra.gmra.mxu1 %v3292_v13  ;;  %v3757_v26 = vsub.f32 %v3755_v22, %v3756_v25 }
 0x953   : > { %5640 = vmatpush3.msra.mxu1 %v3257_v62  ;;  %5641 = vmatprep.mubr.msk.f32.mxu1 %vm6118_vm1, %v6117_v10 }
 0x954   : > { %5649 = vmatprep.subr.mxu1 %v6117_v10  ;;  %v3294_v18 = vand.u32 4294901760, %v3293_v16  ;;  %v3758_v27 = vand.u32 4294901760, %v3757_v26 }
 0x956   : > { %5642 = vmatmul.mubr.f32.vlgmr.msra.gmra.mxu1 %v3294_v18  ;;  %v3295_v21 = vsub.f32 %v3293_v16, %v3294_v18 }
 0x957   : > { %5650 = vmatpush3.msra.mxu1 %v3257_v62  ;;  %5651 = vmatprep.mubr.msk.f32.mxu1 %vm6118_vm1, %v6117_v10 }
 0x958   : > { %5659 = vmatprep.subr.mxu1 %v6117_v10  ;;  %v3296_v23 = vand.u32 4294901760, %v3295_v21 }
 0x95a   : > { %5627 = vmatmul.mubr.f32.vlgmr.msra.gmra.mxu0 %v3296_v23  ;;  %5652 = vmatmul.mubr.f32.vlgmr.msra.gmra.mxu1 %v3292_v13 }
 0x95b   : > { %5635 = vmatpush3.msra.mxu0 %v3334_v63  ;;  %5660 = vmatpush3.xpose.msra.mxu1 %v3799_v24  ;;  %v4607_v24 = vld [vmem:[#allocation12 + $0x18] sm:$0xff] }
 0x95c   : > { %5636 = vmatprep.mubr.msk.f32.mxu0 %vm6118_vm1, %v6117_v10  ;;  %5644 = vmatprep.subr.mxu0 %v6117_v10  ;;  %v6644_v26 = vand.u32 4294901760, %v4607_v24 }
 0x95d   : > { %5661 = vmatprep.mubr.msk.f32.mxu1 %vm6118_vm1, %v6117_v10  ;;  %5669 = vmatprep.subr.mxu1 %v6117_v10 }
 0x95e   : > { %5637 = vmatmul.mubr.f32.vlgmr.msra.gmra.mxu0 %v3293_v16  ;;  %5662 = vmatmul.mubr.f32.vlgmr.msra.gmra.mxu1 %v3754_v17 }
 0x95f   : > { %5645 = vmatpush3.msra.mxu0 %v3335_v1  ;;  %5670 = vmatpush3.xpose.msra.mxu1 %v3719_v5 }
 0x960   : > { %5646 = vmatprep.mubr.msk.f32.mxu0 %vm6118_vm1, %v6117_v10  ;;  %5654 = vmatprep.subr.mxu0 %v6117_v10 }
 0x961   : > { %5671 = vmatprep.mubr.msk.f32.mxu1 %vm6118_vm1, %v6117_v10  ;;  %5679 = vmatprep.subr.mxu1 %v6117_v10 }
 0x962   : > { %5647 = vmatmul.mubr.f32.vlgmr.msra.gmra.mxu0 %v3292_v13  ;;  %5672 = vmatmul.mubr.f32.vlgmr.msra.gmra.mxu1 %v3756_v25 }
 0x963   : > { %5655 = vmatpush3.xpose.msra.mxu0 %v3719_v5  ;;  %5680 = vmatpush3.xpose.msra.mxu1 %v3719_v5 }
 0x964   : > { %5656 = vmatprep.mubr.msk.f32.mxu0 %vm6118_vm1, %v6117_v10  ;;  %5664 = vmatprep.subr.mxu0 %v6117_v10 }
 0x965   : > { %5681 = vmatprep.mubr.msk.f32.mxu1 %vm6118_vm1, %v6117_v10  ;;  %5689 = vmatprep.subr.mxu1 %v6117_v10 }
 0x966   : > { %5657 = vmatmul.mubr.f32.vlgmr.msra.gmra.mxu0 %v3758_v27  ;;  %5682 = vmatmul.mubr.f32.vlgmr.msra.gmra.mxu1 %v3754_v17  ;;  %v4606_v27 = vld [vmem:[#allocation12 + $0x10] sm:$0xff] }
 0x967   : > { %5665 = vmatpush3.xpose.msra.mxu0 %v3796_v8  ;;  %5666 = vmatprep.mubr.msk.f32.mxu0 %vm6118_vm1, %v6117_v10 }
 0x968   : > { %5674 = vmatprep.subr.mxu0 %v6117_v10  ;;  %5691 = vmatprep.mubr.msk.f32.mxu1 %vm6118_vm1, %v6117_v10 }
 0x96a   : > { %5667 = vmatmul.mubr.f32.vlgmr.msra.gmra.mxu0 %v3755_v22 }
 0x96b   : > { %5675 = vmatpush3.xpose.msra.mxu0 %v3797_v14  ;;  %5676 = vmatprep.mubr.msk.f32.mxu0 %vm6118_vm1, %v6117_v10 }
 0x96c   : > { %5684 = vmatprep.subr.mxu0 %v6117_v10 }
 0x96e   : > { %5677 = vmatmul.mubr.f32.vlgmr.msra.gmra.mxu0 %v3754_v17 }
 0x96f   : > { %5686 = vmatprep.mubr.msk.f32.mxu0 %vm6118_vm1, %v6117_v10 }
 0xa12   : > { %v3374_v28 = vpop.f32.mrf.mxu1 }
 0xa14   : > { %v5633_v29 = vpop.f32.mrf.mxu1 }
 0xa15   : > { %v6647_v29 = vsub.f32 %v4607_v24, %v6644_v26 }
 0xa16   : > { %v3522_v30 = vpop.f32.mrf.mxu1 }
 0xa18   : > { %v5643_v31 = vpop.f32.mrf.mxu1 }
 0xa19   : > { %v4605_v31 = vld [vmem:[#allocation12 + $0x8] sm:$0xff] }
 0xa1a   : > { %v3298_v32 = vpop.f32.mrf.mxu0  ;;  %v3668_v33 = vpop.f32.mrf.mxu1 }
 0xa1b   : > { %v3375_v60 = vadd.f32 %v3374_v28, %v3298_v32 }
 0xa1c   : > { %v5628_v34 = vpop.f32.mrf.mxu0  ;;  %v5653_v35 = vpop.f32.mrf.mxu1 }
 0xa1d   : > { %v6657_v35 = vand.u32 4294901760, %v4605_v31 }
 0xa1e   : > { %v3448_v36 = vpop.f32.mrf.mxu0  ;;  %v3836_v37 = vpop.f32.mrf.mxu1 }
 0xa1f   : > { %v3449_v61 = vadd.f32 %v3448_v36, %v3375_v60  ;;  %v4604_v36 = vld [vmem:[#allocation12] sm:$0xff] }
 0xa20   : > { %v5638_v38 = vpop.f32.mrf.mxu0  ;;  %v5663_v40 = vpop.f32.mrf.mxu1 }
 0xa21   : > { %v3523_v62 = vadd.f32 %v3522_v30, %v3449_v61  ;;  %v6649_v30 = vand.u32 4294901760, %v4606_v27 }
 0xa22   : > { %v3596_v41 = vpop.f32.mrf.mxu0  ;;  %v3984_v42 = vpop.f32.mrf.mxu1 }
 0xa23   : > { %v6655_v34 = vsub.f32 %v4606_v27, %v6649_v30 }
 0xa24   : > { %v5648_v43 = vpop.f32.mrf.mxu0  ;;  %v5673_v44 = vpop.f32.mrf.mxu1 }
 0xa25   : > { %v6668_v43 = vand.u32 4294901760, %v4604_v36 }
 0xa26   : > { %v3760_v45 = vpop.f32.mrf.mxu0  ;;  %v4130_v46 = vpop.f32.mrf.mxu1 }
 0xa27   : > { %v3761_v47 = vadd.f32 %v3760_v45, %v6480_v19  ;;  %v3597_v19 = vadd.f32 %v3596_v41, %v3523_v62  ;;  %v4724_v41 = vand.u32 4294901760, %v6655_v34 }
 0xa28   : > { %v5658_v48 = vpop.f32.mrf.mxu0  ;;  %v5683_v49 = vpop.f32.mrf.mxu1 }
 0xa29   : > { %v3837_v50 = vadd.f32 %v3836_v37, %v3761_v47  ;;  %v3669_v63 = vadd.f32 %v3668_v33, %v3597_v19  ;;  %v4717_v33 = vand.u32 4294901760, %v6647_v29  ;;  %v4725_v47 = vsub.f32 %v6655_v34, %v4724_v41 }
 0xa2a   : > { %v3910_v51 = vpop.f32.mrf.mxu0  ;;  %v6677_v49 = vsub.f32 %v4604_v36, %v6668_v43 }
 0xa2b   : > { %v3911_v52 = vadd.f32 %v3910_v51, %v3837_v50  ;;  %v4718_v40 = vsub.f32 %v6647_v29, %v4717_v33 }
 0xa2c   : > { %v5668_v53 = vpop.f32.mrf.mxu0 }
 0xa2d   : > { %v3985_v54 = vadd.f32 %v3984_v42, %v3911_v52  ;;  %v6666_v42 = vsub.f32 %v4605_v31, %v6657_v35  ;;  %v4726_v52 = vand.u32 4294901760, %v4725_v47 }
 0xa2e   : > { %v4058_v55 = vpop.f32.mrf.mxu0 }
 0xa2f   : > { %v4059_v56 = vadd.f32 %v4058_v55, %v3985_v54  ;;  %v4731_v48 = vand.u32 4294901760, %v6666_v42  ;;  %v4738_v54 = vand.u32 4294901760, %v6677_v49 }
 0xa30   : > { %v5678_v57 = vpop.f32.mrf.mxu0 }
 0xa31   : > { %v4131_v58 = vadd.f32 %v4130_v46, %v4059_v56  ;;  %v4719_v46 = vand.u32 4294901760, %v4718_v40  ;;  %v4732_v53 = vsub.f32 %v6666_v42, %v4731_v48 }
 0xa33   : > { %v4134_v59 = vsel %vm913_vm3, %v4131_v58, -inf  ;;  %v4733_v57 = vand.u32 4294901760, %v4732_v53 }
 0xa34   : > { %4135 = vmax.xlane.f32.xlu1 %v4134_v59 }
 0xa45   : > { %4145 = vrot.lane.b32.xlu1 %v6453_v2, %s6129_s26  ;;  %s6036_s26 = scalar_lea.vmem %s5121_s21, 128 }
 0xa46   : > { %p6037_p4 = scmp.ne.s32.totalorder %s5121_s21, %s6036_s26 }
 0xa48   : > { %p6038_p2 = pnand %p6037_p4, %p6810_p5 }
 0xa49   : > { %2748 = vrot.lane.b32.xlu1 %v6573_v39, %s6130_s20  ;;  %s6040_s20 = sshll.u32 %s6133_s11, 4  ;;  %s6041_s20 = int_to_ptr.vmem [resolvable:$false] %s6040_s20 }
 0xa4a   : > { %p6039_p8 = pneg %p6038_p2  ;;  %s6042_s15 = scalar_lea.vmem %s6041_s20, 256 }
 0xa4b   : > { %p6043_p9 = scmp.lt.s32.totalorder %s5121_s21, %s6041_s20  ;;  %p6044_p11 = scmp.lt.s32.totalorder %s6042_s15, %s6036_s26 }
 0xa4d   : > { %3673 = vrot.lane.b32.xlu1 %v3669_v63, %s6131_s16  ;;  %p6045_p7 = por %p6044_p11, %p6043_p9 }
 0xa4f   : > { %p6046_p1 = pnand %p6045_p7, %p6039_p8 }
 0xabd   : > { %v4136_v0 = vpop.xlane.xlu1 %4135 }
 0xabe   : > { %v4137_v1 = vsub.f32 %v4131_v58, %v4136_v0  ;;  %v4739_v58 = vsub.f32 %v6677_v49, %v4738_v54 }
 0xac0   : > { %v4138_v3 = vmul.f32 1.442695, %v4137_v1  ;;  %v4740_v61 = vand.u32 4294901760, %v4739_v58 }
 0xac1   : > { %v4146_v4 = vpop.permute.xlu1 %4145 }
 0xac2   : > { %5899 = vpow2.f32 %v4138_v3  ;;  %v4182_v5 = vand.u32 4294901760, %v4146_v4 }
 0xac4   : > { %v4259_v6 = vsub.f32 %v4146_v4, %v4182_v5  ;;  %5685 = vmatpush3.msra.mxu0 %v4182_v5 }
 0xac5   : > { %v2749_v7 = vpop.permute.xlu1 %2748  ;;  %5694 = vmatprep.subr.mxu0 %v6117_v10 }
 0xac6   : > { %v4260_v2 = vand.u32 4294901760, %v4259_v6  ;;  %2752 = vst.msk [vmem:[#allocation3] sm:$0xff] %vm2751_vm4, %v2749_v7 }
 0xac8   : > { %v4261_v8 = vsub.f32 %v4259_v6, %v4260_v2 }
 0xac9   : > { %v3674_v39 = vpop.permute.xlu1 %3673 }
 0xaca   : > { %v4262_v9 = vand.u32 4294901760, %v4261_v8  ;;  %3677 = vst.msk [vmem:[#allocation3] sm:$0xff] %vm3676_vm5, %v3674_v39 }
 0xacc   : > { %5690 = vmatpush3.msra.mxu1 %v4262_v9 }
 0xacd   : > { %5699 = vmatprep.subr.mxu1 %v6117_v10 }
 0xacf   : > { %v5900_v11 = vpop.eup %5899 }
 0xad0   : > { %v4140_v12 = vsel %vm913_vm3, %v5900_v11, 0.0 }
 0xad1   : > { %4141 = vadd.xlane.f32.xlu0 %v4140_v12 }
 0xb5a   : > { %v4142_v13 = vpop.xlane.xlu0 %4141 }
 0xb5b   : > { %5901 = vrcp.f32 %v4142_v13 }
 0xb68   : > { %v5902_v14 = vpop.eup %5901 }
 0xb69   : > { %v4144_v15 = vmul.f32 %v5902_v14, %v5900_v11 }
 0xb6b   : > { %v4149_v16 = vsel %vm913_vm3, %v4144_v15, 0 }
 0xb6c   : > { %v4217_v17 = vand.u32 4294901760, %v4149_v16 }
 0xb6e   : > { %v4218_v18 = vsub.f32 %v4149_v16, %v4217_v17  ;;  %5692 = vmatmul.mubr.f32.vlgmr.msra.gmra.mxu1 %v4217_v17 }
 0xb6f   : > { %5700 = vmatpush3.msra.mxu1 %v4182_v5  ;;  %5701 = vmatprep.mubr.msk.f32.mxu1 %vm6118_vm1, %v6117_v10 }
 0xb70   : > { %5709 = vmatprep.subr.mxu1 %v6117_v10  ;;  %v4219_v20 = vand.u32 4294901760, %v4218_v18 }
 0xb72   : > { %5702 = vmatmul.mubr.f32.vlgmr.msra.gmra.mxu1 %v4219_v20  ;;  %v4220_v21 = vsub.f32 %v4218_v18, %v4219_v20 }
 0xb73   : > { %5710 = vmatpush3.msra.mxu1 %v4182_v5  ;;  %5711 = vmatprep.mubr.msk.f32.mxu1 %vm6118_vm1, %v6117_v10 }
 0xb74   : > { %v4221_v22 = vand.u32 4294901760, %v4220_v21  ;;  %5725 = vmatprep.subr.mxu1 %v6117_v10 }
 0xb76   : > { %5687 = vmatmul.mubr.f32.vlgmr.msra.gmra.mxu0 %v4221_v22  ;;  %5712 = vmatmul.mubr.f32.vlgmr.msra.gmra.mxu1 %v4217_v17 }
 0xb77   : > { %5695 = vmatpush3.msra.mxu0 %v4259_v6  ;;  %5696 = vmatprep.mubr.msk.f32.mxu0 %vm6118_vm1, %v6117_v10 }
 0xb78   : > { %5704 = vmatprep.subr.mxu0 %v6117_v10  ;;  %5733 = vmatprep.mubr.msk.f32.mxu1 %vm6118_vm1, %v6117_v10 }
 0xb79   : > { %5726 = vmatpush3.msra.mxu1 %v4719_v46 }
 0xb7a   : > { %5697 = vmatmul.mubr.f32.vlgmr.msra.gmra.mxu0 %v4218_v18  ;;  %5727 = vmatprep.subr.mxu1 %v6117_v10 }
 0xb7b   : > { %5705 = vmatpush3.msra.mxu0 %v4260_v2  ;;  %5706 = vmatprep.mubr.msk.f32.mxu0 %vm6118_vm1, %v6117_v10 }
 0xb7c   : > { %5714 = vmatprep.subr.mxu0 %v6117_v10  ;;  %5728 = vmatpush3.msra.mxu1 %v4726_v52 }
 0xb7d   : > { %5729 = vmatprep.subr.mxu1 %v6117_v10 }
 0xb7e   : > { %5707 = vmatmul.mubr.f32.vlgmr.msra.gmra.mxu0 %v4217_v17  ;;  %5730 = vmatpush3.msra.mxu1 %v4733_v57 }
 0xb7f   : > { %5722 = vmatprep.mubr.msk.f32.mxu0 %vm6118_vm1, %v6117_v10  ;;  %5715 = vmatpush3.msra.mxu0 %v6644_v26 }
 0xb80   : > { %5716 = vmatprep.subr.mxu0 %v6117_v10  ;;  %5731 = vmatprep.subr.mxu1 %v6117_v10 }
 0xb81   : > { %5717 = vmatpush3.msra.mxu0 %v6649_v30  ;;  %5732 = vmatpush3.msra.mxu1 %v4740_v61 }
 0xb82   : > { %5718 = vmatprep.subr.mxu0 %v6117_v10  ;;  %5747 = vmatprep.subr.mxu1 %v6117_v10 }
 0xb83   : > { %5719 = vmatpush3.msra.mxu0 %v6657_v35 }
 0xb84   : > { %5720 = vmatprep.subr.mxu0 %v6117_v10 }
 0xb85   : > { %5721 = vmatpush3.msra.mxu0 %v6668_v43 }
 0xb86   : > { %5736 = vmatprep.subr.mxu0 %v6117_v10 }
 0xc2e   : > { %v4299_v23 = vpop.f32.mrf.mxu1 }
 0xc30   : > { %v5693_v25 = vpop.f32.mrf.mxu1 }
 0xc31   : > { %v5247_v25 = vld [vmem:[%s6784_s7] ss:$0 sm:$0xff] }
 0xc32   : > { %v4447_v28 = vpop.f32.mrf.mxu1 }
 0xc34   : > { %v5703_v32 = vpop.f32.mrf.mxu1 }
 0xc36   : > { %v4223_v37 = vpop.f32.mrf.mxu0  ;;  %v4593_v38 = vpop.f32.mrf.mxu1 }
 0xc37   : > { %v4300_v50 = vadd.f32 %v4299_v23, %v4223_v37 }
 0xc38   : > { %v5688_v44 = vpop.f32.mrf.mxu0  ;;  %v5713_v45 = vpop.f32.mrf.mxu1 }
 0xc3a   : > { %v4373_v51 = vpop.f32.mrf.mxu0 }
 0xc3b   : > { %v4374_v55 = vadd.f32 %v4373_v51, %v4300_v50 }
 0xc3c   : > { %v5698_v56 = vpop.f32.mrf.mxu0 }
 0xc3d   : > { %v4448_v59 = vadd.f32 %v4447_v28, %v4374_v55 }
 0xc3e   : > { %v4521_v60 = vpop.f32.mrf.mxu0 }
 0xc3f   : > { %v4522_v62 = vadd.f32 %v4521_v60, %v4448_v59 }
 0xc40   : > { %v5708_v19 = vpop.f32.mrf.mxu0 }
 0xc41   : > { %v4594_v63 = vadd.f32 %v4593_v38, %v4522_v62 }
 0xc43   : > { %4598 = vrot.lane.b32.xlu1 %v4594_v63, %s6132_s22 }
 0xcb5   : > { %v4599_v0 = vpop.permute.xlu1 %4598 }
 0xcb6   : > { %4602 = vst.msk [vmem:[#allocation3] sm:$0xff] %vm4601_vm6, %v4599_v0 }
 0xcbd   : > { %v4603_v1 = vld [vmem:[#allocation3] sm:$0xff] }
 0xcbe   : > { %v4609_v3 = vsel %vm376_vm0, %v4603_v1, 0 }
 0xcbf   : > { %v4680_v4 = vand.u32 4294901760, %v4609_v3 }
 0xcc1   : > { %v4681_v5 = vsub.f32 %v4609_v3, %v4680_v4  ;;  %5734 = vmatmul.mubr.f32.vlgmr.msra.gmra.mxu1 %v4680_v4 }
 0xcc2   : > { %5748 = vmatpush3.msra.mxu1 %v6644_v26  ;;  %5755 = vmatprep.mubr.msk.f32.mxu1 %vm6118_vm1, %v6117_v10 }
 0xcc3   : > { %5749 = vmatprep.subr.mxu1 %v6117_v10  ;;  %v4682_v6 = vand.u32 4294901760, %v4681_v5 }
 0xcc4   : > { %5750 = vmatpush3.msra.mxu1 %v6649_v30 }
 0xcc5   : > { %5751 = vmatprep.subr.mxu1 %v6117_v10  ;;  %v4683_v7 = vsub.f32 %v4681_v5, %v4682_v6 }
 0xcc6   : > { %5752 = vmatpush3.msra.mxu1 %v6657_v35 }
 0xcc7   : > { %5753 = vmatprep.subr.mxu1 %v6117_v10  ;;  %v4684_v2 = vand.u32 4294901760, %v4683_v7 }
 0xcc8   : > { %5754 = vmatpush3.msra.mxu1 %v6668_v43 }
 0xcc9   : > { %5756 = vmatmul.mubr.f32.vlgmr.msra.gmra.mxu1 %v4682_v6  ;;  %5769 = vmatprep.subr.mxu1 %v6117_v10 }
 0xcca   : > { %5723 = vmatmul.mubr.f32.vlgmr.msra.gmra.mxu0 %v4684_v2  ;;  %5770 = vmatpush3.msra.mxu1 %v6644_v26  ;;  %v5903_v26 = vld [vmem:[%s6330_s4] sm:$0xff] }
 0xccb   : > { %5737 = vmatpush3.msra.mxu0 %v6647_v29  ;;  %5771 = vmatprep.subr.mxu1 %v6117_v10 }
 0xccc   : > { %5738 = vmatprep.subr.mxu0 %v6117_v10  ;;  %5772 = vmatpush3.msra.mxu1 %v6649_v30 }
 0xccd   : > { %5739 = vmatpush3.msra.mxu0 %v6655_v34  ;;  %5773 = vmatprep.subr.mxu1 %v6117_v10 }
 0xcce   : > { %5740 = vmatprep.subr.mxu0 %v6117_v10  ;;  %5774 = vmatpush3.msra.mxu1 %v6657_v35 }
 0xccf   : > { %5741 = vmatpush3.msra.mxu0 %v6666_v42  ;;  %5775 = vmatprep.subr.mxu1 %v6117_v10 }
 0xcd0   : > { %5742 = vmatprep.subr.mxu0 %v6117_v10  ;;  %5744 = vmatprep.mubr.msk.f32.mxu0 %vm6118_vm1, %v6117_v10 }
 0xcd1   : > { %5743 = vmatpush3.msra.mxu0 %v6677_v49  ;;  %5776 = vmatpush3.msra.mxu1 %v6668_v43 }
 0xcd2   : > { %5777 = vmatprep.mubr.msk.f32.mxu1 %vm6118_vm1, %v6117_v10  ;;  %5745 = vmatmul.mubr.f32.vlgmr.msra.gmra.mxu0 %v4681_v5 }
 0xcd3   : > { %5758 = vmatprep.subr.mxu0 %v6117_v10  ;;  %5778 = vmatmul.mubr.f32.vlgmr.msra.gmra.mxu1 %v4680_v4 }
 0xcd4   : > { %5759 = vmatpush3.msra.mxu0 %v4717_v33  ;;  %5766 = vmatprep.mubr.msk.f32.mxu0 %vm6118_vm1, %v6117_v10 }
 0xcd5   : > { %5760 = vmatprep.subr.mxu0 %v6117_v10 }
 0xcd6   : > { %5761 = vmatpush3.msra.mxu0 %v4724_v41 }
 0xcd7   : > { %5762 = vmatprep.subr.mxu0 %v6117_v10 }
 0xcd8   : > { %5763 = vmatpush3.msra.mxu0 %v4731_v48 }
 0xcd9   : > { %5764 = vmatprep.subr.mxu0 %v6117_v10 }
 0xcda   : > { %5765 = vmatpush3.msra.mxu0 %v4738_v54 }
 0xcdb   : > { %5767 = vmatmul.mubr.f32.vlgmr.msra.gmra.mxu0 %v4680_v4 }
 0xd81   : > { %v4777_v8 = vpop.f32.mrf.mxu1 }
 0xd83   : > { %v5735_v39 = vpop.f32.mrf.mxu1 }
 0xd89   : > { %v4934_v9 = vpop.f32.mrf.mxu1 }
 0xd8a   : > { %v4686_v11 = vpop.f32.mrf.mxu0 }
 0xd8b   : > { %v5757_v12 = vpop.f32.mrf.mxu1  ;;  %v4778_v16 = vadd.f32 %v4777_v8, %v4686_v11 }
 0xd8c   : > { %v5724_v13 = vpop.f32.mrf.mxu0 }
 0xd92   : > { %v4857_v14 = vpop.f32.mrf.mxu0 }
 0xd93   : > { %v5092_v15 = vpop.f32.mrf.mxu1  ;;  %v4858_v20 = vadd.f32 %v4857_v14, %v4778_v16 }
 0xd94   : > { %v5746_v17 = vpop.f32.mrf.mxu0 }
 0xd95   : > { %v5779_v18 = vpop.f32.mrf.mxu1  ;;  %v4935_v10 = vadd.f32 %v4934_v9, %v4858_v20 }
 0xd9b   : > { %v5017_v21 = vpop.f32.mrf.mxu0 }
 0xd9c   : > { %v5018_v22 = vadd.f32 %v5017_v21, %v4935_v10 }
 0xd9d   : > { %v5768_v23 = vpop.f32.mrf.mxu0 }
 0xd9e   : > { %v5093_v24 = vadd.f32 %v5092_v15, %v5018_v22 }
 0xda0   : > { %v5096_v27 = vadd.f32 %v5903_v26, %v5093_v24 }
 0xda2   : > { %v5104_v28 = vadd.f32 %v5247_v25, %v5096_v27 }
 0xda4   : > { %5105 = vst.msk [vmem:[%s374_s14] sm:$0xff] %vm376_vm0, %v5104_v28 }
 0xda5   : > { %6049 = shalt.err (!%p6046_p1)
}
 0xda6   : > { %s6050_s4 = scalar_lea.hbm %s5118_s3, 128  ;;  %s6054_s22 = scalar_lea.hbm %s6785_s8, 256 }
 0xda7   : > { %p6051_p0 = scmp.ne.s32.totalorder %s5118_s3, %s6050_s4  ;;  %p6055_p10 = scmp.lt.s32.totalorder %s5118_s3, %s6785_s8 }
 0xda8   : > { %p6056_p12 = scmp.lt.s32.totalorder %s6054_s22, %s6050_s4 }
 0xda9   : > { %p6052_p3 = pnand %p6051_p0, %p6810_p5 }
 0xdaa   : > { %p6057_p13 = por %p6056_p12, %p6055_p10 }
 0xdab   : > { %p6053_p6 = pneg %p6052_p3 }
 0xdad   : > { %p6058_p4 = pnand %p6057_p13, %p6053_p6 }
 0xdaf   : > { %6061 = shalt.err (!%p6058_p4)
}
 0xdb0   : > { %5798 = dma.vmem_to_hbm [thread:$0]  (%p6810_p5), %s5121_s21, 128, %s5118_s3, %s5107_s12  }
 0xdb1 PF: > { %s5132_s19 = sand.u32 1, %s6096_s27   ;;  %p6811_p2 = scmp.ne.s32.totalorder %s6802_s13, 0 }
 0xdb2   : > { %p6812_p8 = scmp.ge.s32.totalorder %s6108_s30, 2  ;;  %s5133_s14 = scalar_lea.sflag [#allocation6], %s5132_s19 }
 0xdb4   : > { %p5818_p9 = pnand %p6812_p8, %p6811_p2 }
 0xdb6   : > { %p5819_p11 = pneg %p5818_p9 }
 0xdb8   : > { %6091 = dma.done.wait (%p5819_p11), %s5133_s14, 128  }
 0xdb9   : > { %6093 = vsyncadd (%p5819_p11), %s5133_s14, 4294967168  ;;  %p23_p7 = scmp.ge.s32.totalorder %s6261_s17, 4   ;;  %s6813_s27 = smov %s6100_s28 }
 0xdba   : > { %s6814_s28 = smov %s6104_s29  ;;  %s6815_s29 = smov %s6272_s24 }
 0xdbb   : > { %s6816_s30 = smov %s6261_s17  ;;  %25 = sbr.rel (!%p23_p7) target bundleno = 11 (0xb), region = 113 }
 0xdc0   :  { %5138 = vsyncpa [#allocation5], 1 }
 0xdc1   :  { %5140 = vsyncpa [#allocation5 + $0x1], 1 }
 0xdc2   :  { %5141 = vsyncpa [#allocation8], 1 }
 0xdc3   :  { %5142 = vsyncpa [#allocation11], 1 }
 0xdc4   :  { %5143 = vsyncpa [#allocation6], 1 }
 0xdc5   :  { %5145 = vsyncpa [#allocation6 + $0x1], 1 }

</bundles_post_ra>
